<compile_context>
chip_gen: v5e
topology: v5e:2x2
jax: 0.10.0
libtpu: 0.0.40
codegen_flags: <defaults>
</compile_context>

<pallas_src>
import functools

import jax
import jax.numpy as jnp
from jax.experimental import pallas as pl
from jax.experimental.pallas import tpu as pltpu


def _bn_act(y, g_ref, b_ref, eps, relu):
    """Fused training-mode BatchNorm over the lane axis (+ optional ReLU).

    y: (C, NHW) f32, g_ref/b_ref: (C, 1) f32.  One stacked reduction gives
    sum and sum-of-squares, then a single FMA normalizes.
    """
    C, NHW = y.shape
    inv_n = 1.0 / NHW
    stacked = jnp.concatenate([y, y * y], axis=0)          # (2C, NHW)
    s = jnp.sum(stacked, axis=1, keepdims=True)            # (2C, 1)
    mean = s[:C] * inv_n
    var = jnp.maximum(s[C:] * inv_n - mean * mean, 0.0)
    scale = g_ref[...] * jax.lax.rsqrt(var + eps)
    shift = b_ref[...] - mean * scale
    out = y * scale + shift
    return jnp.maximum(out, 0.0) if relu else out


def basic_block_c_kernel(
    # inputs
    x_ref,             # (N, Cin, H*W)      f32  NCHW input, H*W on lanes
    wcat_ref,          # (inner+planes,Cin) f32  conv1_0 weight stacked over shortcut weight
    g1_ref, b1_ref,    # (inner, 1)         f32  bn1
    w3_ref,            # (inner, 9*inner)   f32  grouped 3x3 as block-diag im2col weight
    g2_ref, b2_ref,    # (inner, 1)         f32  bn2
    w2_ref,            # (planes, inner)    f32  conv1_1 (1x1)
    g3_ref, b3_ref,    # (planes, 1)        f32  bn3
    wfc1_ref,          # (planes//r,planes) f32  channel-attn fc1
    wfc2_ref,          # (planes,planes//r) f32  channel-attn fc2
    w7_ref,            # (1, 98)            f32  7x7 weights, col = kw*14 + kh*2 + {avg,max}
    g0_ref, b0_ref,    # (planes, 1)        f32  bn0
    mask3_ref,         # (9,  N*H*W)        f32  combined zero-pad validity masks (3x3 taps)
    rmask7_ref,        # (7,  N*H*W)        f32  row (height) validity masks, 7x7
    cmask7_ref,        # (7,  N*H*W)        f32  col (width) validity masks, 7x7
    onehot_ref,        # (N,  N*H*W)        f32  image-selector for CA broadcast
    # output
    o_ref,             # (N, planes, H*W)   f32
    # scratch
    xcat_scr,          # VMEM (inner+planes, N*H*W) f32
    cols3_scr,         # VMEM (9*inner, N*H*W)      f32
    *, W,
):
    N, Cin, HW = x_ref.shape
    planes = o_ref.shape[1]
    inner = w3_ref.shape[0]
    NHW = N * HW
    eps = 1e-5
    f32 = jnp.float32

    # ---- conv1_0 (1x1) + shortcut (1x1), fused, per image ------------------
    # Stacked weight -> one matmul per image; lane-aligned stores assemble the
    # (inner+planes, NHW) slab (no in-kernel lane-axis concatenate of x).
    for n in range(N):
        xcat_scr[:, n * HW:(n + 1) * HW] = jnp.dot(
            wcat_ref[...], x_ref[n], preferred_element_type=f32)

    y1 = _bn_act(xcat_scr[:inner, :], g1_ref, b1_ref, eps, relu=True)   # (inner, NHW)

    # ---- conv3_0 (3x3, grouped, pad=1) as one im2col matmul ----------------
    # Each tap is a lane roll + border mask, written straight into the scratch
    # row block; center tap (always valid, delta 0) skips both.
    for kh in range(3):
        for kw in range(3):
            k = kh * 3 + kw
            if kh == 1 and kw == 1:
                cols3_scr[k * inner:(k + 1) * inner, :] = y1
            else:
                delta = (kh - 1) * W + (kw - 1)
                shifted = pltpu.roll(y1, shift=(-delta) % NHW, axis=1)
                cols3_scr[k * inner:(k + 1) * inner, :] = shifted * mask3_ref[k:k + 1, :]
    y2 = _bn_act(jnp.dot(w3_ref[...], cols3_scr[...], preferred_element_type=f32),
                 g2_ref, b2_ref, eps, relu=True)                         # (inner, NHW)

    # ---- conv1_1 (1x1) + bn3 ------------------------------------------------
    y3 = _bn_act(jnp.dot(w2_ref[...], y2, preferred_element_type=f32),
                 g3_ref, b3_ref, eps, relu=False)                        # (planes, NHW)

    # ---- ChannelAttention: batched MLP over all pooled columns --------------
    # pooled columns ordered [avg_0..avg_{N-1} | max_0..max_{N-1}]
    avg_cols = [jnp.mean(y3[:, n * HW:(n + 1) * HW], axis=1, keepdims=True)
                for n in range(N)]
    max_cols = [jnp.max(y3[:, n * HW:(n + 1) * HW], axis=1, keepdims=True)
                for n in range(N)]
    pooled = jnp.concatenate(avg_cols + max_cols, axis=1)                # (planes, 2N)
    hmid = jnp.maximum(jnp.dot(wfc1_ref[...], pooled, preferred_element_type=f32), 0.0)
    z = jnp.dot(wfc2_ref[...], hmid, preferred_element_type=f32)         # (planes, 2N)
    ca_img = jax.nn.sigmoid(z[:, :N] + z[:, N:])                         # (planes, N)
    # Broadcast per-image gate across that image's lanes via a tiny matmul
    # (no broadcast_to slabs, no lane-axis concat).
    ca_lane = jnp.dot(ca_img, onehot_ref[...], preferred_element_type=f32)  # (planes, NHW)
    out_c = y3 * ca_lane

    # ---- SpatialAttention: 7x7 conv over [chan-mean; chan-max] as 1 matmul --
    avg_c = jnp.mean(out_c, axis=0, keepdims=True)                       # (1, NHW)
    max_c = jnp.max(out_c, axis=0, keepdims=True)                        # (1, NHW)
    sam = jnp.concatenate([avg_c, max_c], axis=0)                        # (2, NHW)

    v_blocks = []                                                        # vertical taps
    for kh in range(7):
        dh = (kh - 3) * W
        if dh == 0:
            v_blocks.append(sam)
        else:
            v_blocks.append(pltpu.roll(sam, shift=(-dh) % NHW, axis=1)
                            * rmask7_ref[kh:kh + 1, :])
    vslab = jnp.concatenate(v_blocks, axis=0)                            # (14, NHW)

    c_blocks = []                                                        # horizontal taps
    for kw in range(7):
        dw = kw - 3
        if dw == 0:
            c_blocks.append(vslab)
        else:
            c_blocks.append(pltpu.roll(vslab, shift=(-dw) % NHW, axis=1)
                            * cmask7_ref[kw:kw + 1, :])
    cols7 = jnp.concatenate(c_blocks, axis=0)                            # (98, NHW)

    sa = jax.nn.sigmoid(
        jnp.dot(w7_ref[...], cols7, preferred_element_type=f32))         # (1, NHW)
    out_s = out_c * sa                                                   # broadcast over channels

    # ---- shortcut add + bn0 + relu ------------------------------------------
    sc = xcat_scr[inner:, :]                                             # (planes, NHW)
    out = _bn_act(out_s + sc, g0_ref, b0_ref, eps, relu=True)

    # ---- lane-dense NCHW writeback -------------------------------------------
    for n in range(N):
        o_ref[n] = out[:, n * HW:(n + 1) * HW].astype(o_ref.dtype)


def basic_block_c(x_nchw, params):
    """Wrapper: NCHW in, NCHW out (like the PyTorch module). Only free reshapes."""
    N, Cin, H, W = x_nchw.shape
    HW = H * W
    NHW = N * HW
    inner = params["w1"].shape[0]
    planes = params["w2"].shape[0]

    x = x_nchw.reshape(N, Cin, HW).astype(jnp.float32)                   # free reshape

    # Static zero-padding validity masks (per tap) and the image selector.
    s = jnp.arange(NHW, dtype=jnp.int32)
    hh = (s // W) % H
    ww = s % W

    rows3 = []
    for kh in range(3):
        for kw in range(3):
            oh, ow = kh - 1, kw - 1
            valid = ((hh + oh >= 0) & (hh + oh < H) &
                     (ww + ow >= 0) & (ww + ow < W))
            rows3.append(valid.astype(jnp.float32))
    mask3 = jnp.stack(rows3, axis=0)                                     # (9, NHW)

    rmask7 = jnp.stack(
        [((hh + (kh - 3) >= 0) & (hh + (kh - 3) < H)).astype(jnp.float32)
         for kh in range(7)], axis=0)                                    # (7, NHW)
    cmask7 = jnp.stack(
        [((ww + (kw - 3) >= 0) & (ww + (kw - 3) < W)).astype(jnp.float32)
         for kw in range(7)], axis=0)                                    # (7, NHW)
    onehot = ((s[None, :] // HW) ==
              jnp.arange(N, dtype=jnp.int32)[:, None]).astype(jnp.float32)  # (N, NHW)

    wcat = jnp.concatenate([params["w1"], params["wsc"]], axis=0)        # (inner+planes, Cin)

    vmem = pl.BlockSpec(memory_space=pltpu.MemorySpace.VMEM)
    args = [
        x, wcat,
        params["g1"], params["b1"],
        params["w3"], params["g2"], params["b2"],
        params["w2"], params["g3"], params["b3"],
        params["wfc1"], params["wfc2"],
        params["w7m"],
        params["g0"], params["b0"],
        mask3, rmask7, cmask7, onehot,
    ]

    out = pl.pallas_call(
        functools.partial(basic_block_c_kernel, W=W),
        out_shape=jax.ShapeDtypeStruct((N, planes, HW), jnp.float32),
        in_specs=[vmem] * len(args),
        out_specs=vmem,
        scratch_shapes=[
            pltpu.VMEM((inner + planes, NHW), jnp.float32),              # conv1_0 + shortcut
            pltpu.VMEM((9 * inner, NHW), jnp.float32),                   # 3x3 im2col cols
        ],
        compiler_params=pltpu.CompilerParams(
            vmem_limit_bytes=32 * 1024 * 1024),
    )(*args)
    return out.reshape(N, planes, H, W)                                  # free reshape


def init_params(key, in_planes, bottleneck_width=2, cardinality=4,
                expansion=2, reduction=4):
    """Deterministic synthetic parameters matching the module's shapes."""
    inner = cardinality * bottleneck_width
    planes = inner * expansion
    gs = inner // cardinality
    ks = jax.random.split(key, 12)

    def rnd(k, shape, scale=0.2):
        return scale * jax.random.normal(k, shape, jnp.float32)

    w1 = rnd(ks[0], (inner, in_planes))                   # conv1_0 (out, in)

    # grouped 3x3 conv -> block-diagonal dense im2col weight (inner, 9*inner);
    # column block k = kh*3 + kw holds the dense per-tap matrix.
    wg = rnd(ks[1], (cardinality, gs, gs, 3, 3))          # [group, out_l, in_l, kh, kw]
    w3 = jnp.zeros((inner, 9 * inner), jnp.float32)
    for kh in range(3):
        for kw in range(3):
            k = kh * 3 + kw
            for g in range(cardinality):
                w3 = w3.at[g * gs:(g + 1) * gs,
                           k * inner + g * gs: k * inner + (g + 1) * gs].set(
                               wg[g, :, :, kh, kw])

    w2 = rnd(ks[2], (planes, inner))                      # conv1_1 (out, in)
    wfc1 = rnd(ks[3], (planes // reduction, planes))      # channel-attn fc1
    wfc2 = rnd(ks[4], (planes, planes // reduction))      # channel-attn fc2
    # spatial 7x7 conv weight (c={avg,max}, kh, kw) -> (1, 98), col = kw*14 + kh*2 + c
    w7_conv = rnd(ks[5], (2, 7, 7))
    w7m = jnp.transpose(w7_conv, (2, 1, 0)).reshape(1, 98)
    wsc = rnd(ks[6], (planes, in_planes))                 # shortcut 1x1 conv

    def bn(k, c):
        k1, k2 = jax.random.split(k)
        gamma = 1.0 + 0.1 * jax.random.normal(k1, (c, 1), jnp.float32)
        beta = 0.1 * jax.random.normal(k2, (c, 1), jnp.float32)
        return gamma, beta

    g1, b1 = bn(ks[7], inner)
    g2, b2 = bn(ks[8], inner)
    g3, b3 = bn(ks[9], planes)
    g0, b0 = bn(ks[10], planes)

    return dict(w1=w1, g1=g1, b1=b1, w3=w3, g2=g2, b2=b2, w2=w2, g3=g3, b3=b3,
                wfc1=wfc1, wfc2=wfc2, w7m=w7m, wsc=wsc, g0=g0, b0=b0)


if __name__ == "__main__":
    key = jax.random.PRNGKey(0)
    kx, kp = jax.random.split(key)

    # Small config consistent with the module:
    #   in_planes=4, cardinality=4, bottleneck_width=2 -> inner_width=8
    #   expansion=2 -> planes=16, reduction=4 -> squeeze dim 4
    in_planes = 4
    N, H, W = 2, 16, 16
    x = jax.random.normal(kx, (N, in_planes, H, W), jnp.float32)         # NCHW

    params = init_params(kp, in_planes,
                         bottleneck_width=2, cardinality=4,
                         expansion=2, reduction=4)

    y = basic_block_c(x, params)
    y = jax.block_until_ready(y)
    assert y.shape == (N, 16, H, W), y.shape                             # planes = 16
    assert bool(jnp.all(jnp.isfinite(y)))
    print("KERNEL_OK")
</pallas_src>

<mosaic_0001>
module attributes {stable_mosaic.version = 11 : i64} {
  func.func @basic_block_c_kernel(%arg0: memref<2x4x256xf32, #tpu.memory_space<vmem>>, %arg1: memref<24x4xf32, #tpu.memory_space<vmem>>, %arg2: memref<8x1xf32, #tpu.memory_space<vmem>>, %arg3: memref<8x1xf32, #tpu.memory_space<vmem>>, %arg4: memref<8x72xf32, #tpu.memory_space<vmem>>, %arg5: memref<8x1xf32, #tpu.memory_space<vmem>>, %arg6: memref<8x1xf32, #tpu.memory_space<vmem>>, %arg7: memref<16x8xf32, #tpu.memory_space<vmem>>, %arg8: memref<16x1xf32, #tpu.memory_space<vmem>>, %arg9: memref<16x1xf32, #tpu.memory_space<vmem>>, %arg10: memref<4x16xf32, #tpu.memory_space<vmem>>, %arg11: memref<16x4xf32, #tpu.memory_space<vmem>>, %arg12: memref<1x98xf32, #tpu.memory_space<vmem>>, %arg13: memref<16x1xf32, #tpu.memory_space<vmem>>, %arg14: memref<16x1xf32, #tpu.memory_space<vmem>>, %arg15: memref<9x512xf32, #tpu.memory_space<vmem>>, %arg16: memref<7x512xf32, #tpu.memory_space<vmem>>, %arg17: memref<7x512xf32, #tpu.memory_space<vmem>>, %arg18: memref<2x512xf32, #tpu.memory_space<vmem>>, %arg19: memref<2x16x256xf32, #tpu.memory_space<vmem>>, %arg20: memref<24x512xf32, #tpu.memory_space<vmem>>, %arg21: memref<72x512xf32, #tpu.memory_space<vmem>>) attributes {dimension_semantics = [], scalar_prefetch = 0 : i64, scratch_operands = 2 : i64, tpu.core_type = #tpu.core_type<tc>} {
    %c0 = arith.constant 0 : index
    %c0_0 = arith.constant 0 : index
    %0 = vector.load %arg1[%c0, %c0_0] : memref<24x4xf32, #tpu.memory_space<vmem>>, vector<24x4xf32>
    %c0_1 = arith.constant 0 : index
    %c0_2 = arith.constant 0 : index
    %c0_3 = arith.constant 0 : index
    %1 = vector.load %arg0[%c0_1, %c0_2, %c0_3] : memref<2x4x256xf32, #tpu.memory_space<vmem>>, vector<1x4x256xf32>
    %2 = vector.shape_cast %1 : vector<1x4x256xf32> to vector<4x256xf32>
    %cst = arith.constant dense<0.000000e+00> : vector<24x256xf32>
    %3 = tpu.matmul %0, %2, %cst {dimension_numbers = #tpu.dot_dimension_numbers<[1], [0], [0], [1], [0, 0, 1, 1], [], []>} : vector<24x4xf32>, vector<4x256xf32>, vector<24x256xf32> -> vector<24x256xf32>
    %c0_4 = arith.constant 0 : index
    %c0_5 = arith.constant 0 : index
    %4 = vector.load %arg20[%c0_4, %c0_5] : memref<24x512xf32, #tpu.memory_space<vmem>>, vector<24x256xf32>
    tpu.vector_store %arg20[%c0_4, %c0_5], %3 {strides = array<i32>} : memref<24x512xf32, #tpu.memory_space<vmem>>, vector<24x256xf32>,
    %c0_6 = arith.constant 0 : index
    %c0_7 = arith.constant 0 : index
    %5 = vector.load %arg1[%c0_6, %c0_7] : memref<24x4xf32, #tpu.memory_space<vmem>>, vector<24x4xf32>
    %c1 = arith.constant 1 : index
    %c0_8 = arith.constant 0 : index
    %c0_9 = arith.constant 0 : index
    %6 = vector.load %arg0[%c1, %c0_8, %c0_9] : memref<2x4x256xf32, #tpu.memory_space<vmem>>, vector<1x4x256xf32>
    %7 = vector.shape_cast %6 : vector<1x4x256xf32> to vector<4x256xf32>
    %cst_10 = arith.constant dense<0.000000e+00> : vector<24x256xf32>
    %8 = tpu.matmul %5, %7, %cst_10 {dimension_numbers = #tpu.dot_dimension_numbers<[1], [0], [0], [1], [0, 0, 1, 1], [], []>} : vector<24x4xf32>, vector<4x256xf32>, vector<24x256xf32> -> vector<24x256xf32>
    %c0_11 = arith.constant 0 : index
    %c256 = arith.constant 256 : index
    %9 = vector.load %arg20[%c0_11, %c256] : memref<24x512xf32, #tpu.memory_space<vmem>>, vector<24x256xf32>
    tpu.vector_store %arg20[%c0_11, %c256], %8 {strides = array<i32>} : memref<24x512xf32, #tpu.memory_space<vmem>>, vector<24x256xf32>,
    %c0_12 = arith.constant 0 : index
    %c0_13 = arith.constant 0 : index
    %10 = vector.load %arg20[%c0_12, %c0_13] : memref<24x512xf32, #tpu.memory_space<vmem>>, vector<8x512xf32>
    %11 = arith.mulf %10, %10 : vector<8x512xf32>
    %12 = tpu.concatenate %10, %11 in 0 : vector<8x512xf32>, vector<8x512xf32> -> vector<16x512xf32>
    %cst_14 = arith.constant dense<0.000000e+00> : vector<16xf32>
    %13 = vector.multi_reduction <add>, %12, %cst_14 [1] : vector<16x512xf32> to vector<16xf32>
    %14 = vector.shape_cast %13 : vector<16xf32> to vector<16x1xf32>
    %15 = vector.extract_strided_slice %14 {offsets = [0, 0], sizes = [8, 1], strides = [1, 1]} : vector<16x1xf32> to vector<8x1xf32>
    %cst_15 = arith.constant 0.001953125 : f32
    %16 = vector.broadcast %cst_15 : f32 to vector<8x1xf32>
    %17 = arith.mulf %15, %16 : vector<8x1xf32>
    %18 = vector.extract_strided_slice %14 {offsets = [8, 0], sizes = [8, 1], strides = [1, 1]} : vector<16x1xf32> to vector<8x1xf32>
    %cst_16 = arith.constant 0.001953125 : f32
    %19 = vector.broadcast %cst_16 : f32 to vector<8x1xf32>
    %20 = arith.mulf %18, %19 : vector<8x1xf32>
    %21 = arith.mulf %17, %17 : vector<8x1xf32>
    %22 = arith.subf %20, %21 : vector<8x1xf32>
    %cst_17 = arith.constant 0.000000e+00 : f32
    %23 = vector.broadcast %cst_17 : f32 to vector<8x1xf32>
    %24 = arith.maximumf %22, %23 : vector<8x1xf32>
    %c0_18 = arith.constant 0 : index
    %c0_19 = arith.constant 0 : index
    %25 = vector.load %arg2[%c0_18, %c0_19] : memref<8x1xf32, #tpu.memory_space<vmem>>, vector<8x1xf32>
    %cst_20 = arith.constant 9.99999974E-6 : f32
    %26 = vector.broadcast %cst_20 : f32 to vector<8x1xf32>
    %27 = arith.addf %24, %26 : vector<8x1xf32>
    %28 = math.rsqrt %27 : vector<8x1xf32>
    %29 = arith.mulf %25, %28 : vector<8x1xf32>
    %c0_21 = arith.constant 0 : index
    %c0_22 = arith.constant 0 : index
    %30 = vector.load %arg3[%c0_21, %c0_22] : memref<8x1xf32, #tpu.memory_space<vmem>>, vector<8x1xf32>
    %31 = arith.mulf %17, %29 : vector<8x1xf32>
    %32 = arith.subf %30, %31 : vector<8x1xf32>
    %33 = vector.broadcast %29 : vector<8x1xf32> to vector<8x512xf32>
    %34 = arith.mulf %10, %33 : vector<8x512xf32>
    %35 = vector.broadcast %32 : vector<8x1xf32> to vector<8x512xf32>
    %36 = arith.addf %34, %35 : vector<8x512xf32>
    %cst_23 = arith.constant 0.000000e+00 : f32
    %37 = vector.broadcast %cst_23 : f32 to vector<8x512xf32>
    %38 = arith.maximumf %36, %37 : vector<8x512xf32>
    %c17_i32 = arith.constant 17 : i32
    %39 = tpu.dynamic_rotate %38 by %c17_i32 dim 1 : vector<8x512xf32>, i32 -> vector<8x512xf32>
    %c0_24 = arith.constant 0 : index
    %c0_25 = arith.constant 0 : index
    %40 = vector.load %arg15[%c0_24, %c0_25] : memref<9x512xf32, #tpu.memory_space<vmem>>, vector<1x512xf32>
    %41 = vector.broadcast %40 : vector<1x512xf32> to vector<8x512xf32>
    %42 = arith.mulf %39, %41 : vector<8x512xf32>
    %c0_26 = arith.constant 0 : index
    %c0_27 = arith.constant 0 : index
    %43 = vector.load %arg21[%c0_26, %c0_27] : memref<72x512xf32, #tpu.memory_space<vmem>>, vector<8x512xf32>
    tpu.vector_store %arg21[%c0_26, %c0_27], %42 {strides = array<i32>} : memref<72x512xf32, #tpu.memory_space<vmem>>, vector<8x512xf32>,
    %c16_i32 = arith.constant 16 : i32
    %44 = tpu.dynamic_rotate %38 by %c16_i32 dim 1 : vector<8x512xf32>, i32 -> vector<8x512xf32>
    %c1_28 = arith.constant 1 : index
    %c0_29 = arith.constant 0 : index
    %45 = vector.load %arg15[%c1_28, %c0_29] : memref<9x512xf32, #tpu.memory_space<vmem>>, vector<1x512xf32>
    %46 = vector.broadcast %45 : vector<1x512xf32> to vector<8x512xf32>
    %47 = arith.mulf %44, %46 : vector<8x512xf32>
    %c8 = arith.constant 8 : index
    %c0_30 = arith.constant 0 : index
    %48 = vector.load %arg21[%c8, %c0_30] : memref<72x512xf32, #tpu.memory_space<vmem>>, vector<8x512xf32>
    tpu.vector_store %arg21[%c8, %c0_30], %47 {strides = array<i32>} : memref<72x512xf32, #tpu.memory_space<vmem>>, vector<8x512xf32>,
    %c15_i32 = arith.constant 15 : i32
    %49 = tpu.dynamic_rotate %38 by %c15_i32 dim 1 : vector<8x512xf32>, i32 -> vector<8x512xf32>
    %c2 = arith.constant 2 : index
    %c0_31 = arith.constant 0 : index
    %50 = vector.load %arg15[%c2, %c0_31] : memref<9x512xf32, #tpu.memory_space<vmem>>, vector<1x512xf32>
    %51 = vector.broadcast %50 : vector<1x512xf32> to vector<8x512xf32>
    %52 = arith.mulf %49, %51 : vector<8x512xf32>
    %c16 = arith.constant 16 : index
    %c0_32 = arith.constant 0 : index
    %53 = vector.load %arg21[%c16, %c0_32] : memref<72x512xf32, #tpu.memory_space<vmem>>, vector<8x512xf32>
    tpu.vector_store %arg21[%c16, %c0_32], %52 {strides = array<i32>} : memref<72x512xf32, #tpu.memory_space<vmem>>, vector<8x512xf32>,
    %c1_i32 = arith.constant 1 : i32
    %54 = tpu.dynamic_rotate %38 by %c1_i32 dim 1 : vector<8x512xf32>, i32 -> vector<8x512xf32>
    %c3 = arith.constant 3 : index
    %c0_33 = arith.constant 0 : index
    %55 = vector.load %arg15[%c3, %c0_33] : memref<9x512xf32, #tpu.memory_space<vmem>>, vector<1x512xf32>
    %56 = vector.broadcast %55 : vector<1x512xf32> to vector<8x512xf32>
    %57 = arith.mulf %54, %56 : vector<8x512xf32>
    %c24 = arith.constant 24 : index
    %c0_34 = arith.constant 0 : index
    %58 = vector.load %arg21[%c24, %c0_34] : memref<72x512xf32, #tpu.memory_space<vmem>>, vector<8x512xf32>
    tpu.vector_store %arg21[%c24, %c0_34], %57 {strides = array<i32>} : memref<72x512xf32, #tpu.memory_space<vmem>>, vector<8x512xf32>,
    %c32 = arith.constant 32 : index
    %c0_35 = arith.constant 0 : index
    %59 = vector.load %arg21[%c32, %c0_35] : memref<72x512xf32, #tpu.memory_space<vmem>>, vector<8x512xf32>
    tpu.vector_store %arg21[%c32, %c0_35], %38 {strides = array<i32>} : memref<72x512xf32, #tpu.memory_space<vmem>>, vector<8x512xf32>,
    %c511_i32 = arith.constant 511 : i32
    %60 = tpu.dynamic_rotate %38 by %c511_i32 dim 1 : vector<8x512xf32>, i32 -> vector<8x512xf32>
    %c5 = arith.constant 5 : index
    %c0_36 = arith.constant 0 : index
    %61 = vector.load %arg15[%c5, %c0_36] : memref<9x512xf32, #tpu.memory_space<vmem>>, vector<1x512xf32>
    %62 = vector.broadcast %61 : vector<1x512xf32> to vector<8x512xf32>
    %63 = arith.mulf %60, %62 : vector<8x512xf32>
    %c40 = arith.constant 40 : index
    %c0_37 = arith.constant 0 : index
    %64 = vector.load %arg21[%c40, %c0_37] : memref<72x512xf32, #tpu.memory_space<vmem>>, vector<8x512xf32>
    tpu.vector_store %arg21[%c40, %c0_37], %63 {strides = array<i32>} : memref<72x512xf32, #tpu.memory_space<vmem>>, vector<8x512xf32>,
    %c497_i32 = arith.constant 497 : i32
    %65 = tpu.dynamic_rotate %38 by %c497_i32 dim 1 : vector<8x512xf32>, i32 -> vector<8x512xf32>
    %c6 = arith.constant 6 : index
    %c0_38 = arith.constant 0 : index
    %66 = vector.load %arg15[%c6, %c0_38] : memref<9x512xf32, #tpu.memory_space<vmem>>, vector<1x512xf32>
    %67 = vector.broadcast %66 : vector<1x512xf32> to vector<8x512xf32>
    %68 = arith.mulf %65, %67 : vector<8x512xf32>
    %c48 = arith.constant 48 : index
    %c0_39 = arith.constant 0 : index
    %69 = vector.load %arg21[%c48, %c0_39] : memref<72x512xf32, #tpu.memory_space<vmem>>, vector<8x512xf32>
    tpu.vector_store %arg21[%c48, %c0_39], %68 {strides = array<i32>} : memref<72x512xf32, #tpu.memory_space<vmem>>, vector<8x512xf32>,
    %c496_i32 = arith.constant 496 : i32
    %70 = tpu.dynamic_rotate %38 by %c496_i32 dim 1 : vector<8x512xf32>, i32 -> vector<8x512xf32>
    %c7 = arith.constant 7 : index
    %c0_40 = arith.constant 0 : index
    %71 = vector.load %arg15[%c7, %c0_40] : memref<9x512xf32, #tpu.memory_space<vmem>>, vector<1x512xf32>
    %72 = vector.broadcast %71 : vector<1x512xf32> to vector<8x512xf32>
    %73 = arith.mulf %70, %72 : vector<8x512xf32>
    %c56 = arith.constant 56 : index
    %c0_41 = arith.constant 0 : index
    %74 = vector.load %arg21[%c56, %c0_41] : memref<72x512xf32, #tpu.memory_space<vmem>>, vector<8x512xf32>
    tpu.vector_store %arg21[%c56, %c0_41], %73 {strides = array<i32>} : memref<72x512xf32, #tpu.memory_space<vmem>>, vector<8x512xf32>,
    %c495_i32 = arith.constant 495 : i32
    %75 = tpu.dynamic_rotate %38 by %c495_i32 dim 1 : vector<8x512xf32>, i32 -> vector<8x512xf32>
    %c8_42 = arith.constant 8 : index
    %c0_43 = arith.constant 0 : index
    %76 = vector.load %arg15[%c8_42, %c0_43] : memref<9x512xf32, #tpu.memory_space<vmem>>, vector<1x512xf32>
    %77 = vector.broadcast %76 : vector<1x512xf32> to vector<8x512xf32>
    %78 = arith.mulf %75, %77 : vector<8x512xf32>
    %c64 = arith.constant 64 : index
    %c0_44 = arith.constant 0 : index
    %79 = vector.load %arg21[%c64, %c0_44] : memref<72x512xf32, #tpu.memory_space<vmem>>, vector<8x512xf32>
    tpu.vector_store %arg21[%c64, %c0_44], %78 {strides = array<i32>} : memref<72x512xf32, #tpu.memory_space<vmem>>, vector<8x512xf32>,
    %c0_45 = arith.constant 0 : index
    %c0_46 = arith.constant 0 : index
    %80 = vector.load %arg4[%c0_45, %c0_46] : memref<8x72xf32, #tpu.memory_space<vmem>>, vector<8x72xf32>
    %c0_47 = arith.constant 0 : index
    %c0_48 = arith.constant 0 : index
    %81 = vector.load %arg21[%c0_47, %c0_48] : memref<72x512xf32, #tpu.memory_space<vmem>>, vector<72x512xf32>
    %cst_49 = arith.constant dense<0.000000e+00> : vector<8x512xf32>
    %82 = tpu.matmul %80, %81, %cst_49 {dimension_numbers = #tpu.dot_dimension_numbers<[1], [0], [0], [1], [0, 0, 1, 1], [], []>} : vector<8x72xf32>, vector<72x512xf32>, vector<8x512xf32> -> vector<8x512xf32>
    %83 = arith.mulf %82, %82 : vector<8x512xf32>
    %84 = tpu.concatenate %82, %83 in 0 : vector<8x512xf32>, vector<8x512xf32> -> vector<16x512xf32>
    %cst_50 = arith.constant dense<0.000000e+00> : vector<16xf32>
    %85 = vector.multi_reduction <add>, %84, %cst_50 [1] : vector<16x512xf32> to vector<16xf32>
    %86 = vector.shape_cast %85 : vector<16xf32> to vector<16x1xf32>
    %87 = vector.extract_strided_slice %86 {offsets = [0, 0], sizes = [8, 1], strides = [1, 1]} : vector<16x1xf32> to vector<8x1xf32>
    %cst_51 = arith.constant 0.001953125 : f32
    %88 = vector.broadcast %cst_51 : f32 to vector<8x1xf32>
    %89 = arith.mulf %87, %88 : vector<8x1xf32>
    %90 = vector.extract_strided_slice %86 {offsets = [8, 0], sizes = [8, 1], strides = [1, 1]} : vector<16x1xf32> to vector<8x1xf32>
    %cst_52 = arith.constant 0.001953125 : f32
    %91 = vector.broadcast %cst_52 : f32 to vector<8x1xf32>
    %92 = arith.mulf %90, %91 : vector<8x1xf32>
    %93 = arith.mulf %89, %89 : vector<8x1xf32>
    %94 = arith.subf %92, %93 : vector<8x1xf32>
    %cst_53 = arith.constant 0.000000e+00 : f32
    %95 = vector.broadcast %cst_53 : f32 to vector<8x1xf32>
    %96 = arith.maximumf %94, %95 : vector<8x1xf32>
    %c0_54 = arith.constant 0 : index
    %c0_55 = arith.constant 0 : index
    %97 = vector.load %arg5[%c0_54, %c0_55] : memref<8x1xf32, #tpu.memory_space<vmem>>, vector<8x1xf32>
    %cst_56 = arith.constant 9.99999974E-6 : f32
    %98 = vector.broadcast %cst_56 : f32 to vector<8x1xf32>
    %99 = arith.addf %96, %98 : vector<8x1xf32>
    %100 = math.rsqrt %99 : vector<8x1xf32>
    %101 = arith.mulf %97, %100 : vector<8x1xf32>
    %c0_57 = arith.constant 0 : index
    %c0_58 = arith.constant 0 : index
    %102 = vector.load %arg6[%c0_57, %c0_58] : memref<8x1xf32, #tpu.memory_space<vmem>>, vector<8x1xf32>
    %103 = arith.mulf %89, %101 : vector<8x1xf32>
    %104 = arith.subf %102, %103 : vector<8x1xf32>
    %105 = vector.broadcast %101 : vector<8x1xf32> to vector<8x512xf32>
    %106 = arith.mulf %82, %105 : vector<8x512xf32>
    %107 = vector.broadcast %104 : vector<8x1xf32> to vector<8x512xf32>
    %108 = arith.addf %106, %107 : vector<8x512xf32>
    %cst_59 = arith.constant 0.000000e+00 : f32
    %109 = vector.broadcast %cst_59 : f32 to vector<8x512xf32>
    %110 = arith.maximumf %108, %109 : vector<8x512xf32>
    %c0_60 = arith.constant 0 : index
    %c0_61 = arith.constant 0 : index
    %111 = vector.load %arg7[%c0_60, %c0_61] : memref<16x8xf32, #tpu.memory_space<vmem>>, vector<16x8xf32>
    %cst_62 = arith.constant dense<0.000000e+00> : vector<16x512xf32>
    %112 = tpu.matmul %111, %110, %cst_62 {dimension_numbers = #tpu.dot_dimension_numbers<[1], [0], [0], [1], [0, 0, 1, 1], [], []>} : vector<16x8xf32>, vector<8x512xf32>, vector<16x512xf32> -> vector<16x512xf32>
    %113 = arith.mulf %112, %112 : vector<16x512xf32>
    %114 = tpu.concatenate %112, %113 in 0 : vector<16x512xf32>, vector<16x512xf32> -> vector<32x512xf32>
    %cst_63 = arith.constant dense<0.000000e+00> : vector<32xf32>
    %115 = vector.multi_reduction <add>, %114, %cst_63 [1] : vector<32x512xf32> to vector<32xf32>
    %116 = vector.shape_cast %115 : vector<32xf32> to vector<32x1xf32>
    %117 = vector.extract_strided_slice %116 {offsets = [0, 0], sizes = [16, 1], strides = [1, 1]} : vector<32x1xf32> to vector<16x1xf32>
    %cst_64 = arith.constant 0.001953125 : f32
    %118 = vector.broadcast %cst_64 : f32 to vector<16x1xf32>
    %119 = arith.mulf %117, %118 : vector<16x1xf32>
    %120 = vector.extract_strided_slice %116 {offsets = [16, 0], sizes = [16, 1], strides = [1, 1]} : vector<32x1xf32> to vector<16x1xf32>
    %cst_65 = arith.constant 0.001953125 : f32
    %121 = vector.broadcast %cst_65 : f32 to vector<16x1xf32>
    %122 = arith.mulf %120, %121 : vector<16x1xf32>
    %123 = arith.mulf %119, %119 : vector<16x1xf32>
    %124 = arith.subf %122, %123 : vector<16x1xf32>
    %cst_66 = arith.constant 0.000000e+00 : f32
    %125 = vector.broadcast %cst_66 : f32 to vector<16x1xf32>
    %126 = arith.maximumf %124, %125 : vector<16x1xf32>
    %c0_67 = arith.constant 0 : index
    %c0_68 = arith.constant 0 : index
    %127 = vector.load %arg8[%c0_67, %c0_68] : memref<16x1xf32, #tpu.memory_space<vmem>>, vector<16x1xf32>
    %cst_69 = arith.constant 9.99999974E-6 : f32
    %128 = vector.broadcast %cst_69 : f32 to vector<16x1xf32>
    %129 = arith.addf %126, %128 : vector<16x1xf32>
    %130 = math.rsqrt %129 : vector<16x1xf32>
    %131 = arith.mulf %127, %130 : vector<16x1xf32>
    %c0_70 = arith.constant 0 : index
    %c0_71 = arith.constant 0 : index
    %132 = vector.load %arg9[%c0_70, %c0_71] : memref<16x1xf32, #tpu.memory_space<vmem>>, vector<16x1xf32>
    %133 = arith.mulf %119, %131 : vector<16x1xf32>
    %134 = arith.subf %132, %133 : vector<16x1xf32>
    %135 = vector.broadcast %131 : vector<16x1xf32> to vector<16x512xf32>
    %136 = arith.mulf %112, %135 : vector<16x512xf32>
    %137 = vector.broadcast %134 : vector<16x1xf32> to vector<16x512xf32>
    %138 = arith.addf %136, %137 : vector<16x512xf32>
    %139 = vector.extract_strided_slice %138 {offsets = [0, 0], sizes = [16, 256], strides = [1, 1]} : vector<16x512xf32> to vector<16x256xf32>
    %cst_72 = arith.constant dense<0.000000e+00> : vector<16xf32>
    %140 = vector.multi_reduction <add>, %139, %cst_72 [1] : vector<16x256xf32> to vector<16xf32>
    %141 = vector.shape_cast %140 : vector<16xf32> to vector<16x1xf32>
    %cst_73 = arith.constant 2.560000e+02 : f32
    %142 = vector.broadcast %cst_73 : f32 to vector<16x1xf32>
    %143 = arith.divf %141, %142 : vector<16x1xf32>
    %144 = vector.extract_strided_slice %138 {offsets = [0, 256], sizes = [16, 256], strides = [1, 1]} : vector<16x512xf32> to vector<16x256xf32>
    %cst_74 = arith.constant dense<0.000000e+00> : vector<16xf32>
    %145 = vector.multi_reduction <add>, %144, %cst_74 [1] : vector<16x256xf32> to vector<16xf32>
    %146 = vector.shape_cast %145 : vector<16xf32> to vector<16x1xf32>
    %cst_75 = arith.constant 2.560000e+02 : f32
    %147 = vector.broadcast %cst_75 : f32 to vector<16x1xf32>
    %148 = arith.divf %146, %147 : vector<16x1xf32>
    %149 = vector.extract_strided_slice %138 {offsets = [0, 0], sizes = [16, 256], strides = [1, 1]} : vector<16x512xf32> to vector<16x256xf32>
    %cst_76 = arith.constant dense<0xFF800000> : vector<16xf32>
    %150 = vector.multi_reduction <maximumf>, %149, %cst_76 [1] : vector<16x256xf32> to vector<16xf32>
    %151 = vector.shape_cast %150 : vector<16xf32> to vector<16x1xf32>
    %152 = vector.extract_strided_slice %138 {offsets = [0, 256], sizes = [16, 256], strides = [1, 1]} : vector<16x512xf32> to vector<16x256xf32>
    %cst_77 = arith.constant dense<0xFF800000> : vector<16xf32>
    %153 = vector.multi_reduction <maximumf>, %152, %cst_77 [1] : vector<16x256xf32> to vector<16xf32>
    %154 = vector.shape_cast %153 : vector<16xf32> to vector<16x1xf32>
    %155 = tpu.concatenate %143, %148, %151, %154 in 1 : vector<16x1xf32>, vector<16x1xf32>, vector<16x1xf32>, vector<16x1xf32> -> vector<16x4xf32>
    %c0_78 = arith.constant 0 : index
    %c0_79 = arith.constant 0 : index
    %156 = vector.load %arg10[%c0_78, %c0_79] : memref<4x16xf32, #tpu.memory_space<vmem>>, vector<4x16xf32>
    %cst_80 = arith.constant dense<0.000000e+00> : vector<4x4xf32>
    %157 = tpu.matmul %156, %155, %cst_80 {dimension_numbers = #tpu.dot_dimension_numbers<[1], [0], [0], [1], [0, 0, 1, 1], [], []>} : vector<4x16xf32>, vector<16x4xf32>, vector<4x4xf32> -> vector<4x4xf32>
    %cst_81 = arith.constant 0.000000e+00 : f32
    %158 = vector.broadcast %cst_81 : f32 to vector<4x4xf32>
    %159 = arith.maximumf %157, %158 : vector<4x4xf32>
    %c0_82 = arith.constant 0 : index
    %c0_83 = arith.constant 0 : index
    %160 = vector.load %arg11[%c0_82, %c0_83] : memref<16x4xf32, #tpu.memory_space<vmem>>, vector<16x4xf32>
    %cst_84 = arith.constant dense<0.000000e+00> : vector<16x4xf32>
    %161 = tpu.matmul %160, %159, %cst_84 {dimension_numbers = #tpu.dot_dimension_numbers<[1], [0], [0], [1], [0, 0, 1, 1], [], []>} : vector<16x4xf32>, vector<4x4xf32>, vector<16x4xf32> -> vector<16x4xf32>
    %162 = vector.extract_strided_slice %161 {offsets = [0, 0], sizes = [16, 2], strides = [1, 1]} : vector<16x4xf32> to vector<16x2xf32>
    %163 = vector.extract_strided_slice %161 {offsets = [0, 2], sizes = [16, 2], strides = [1, 1]} : vector<16x4xf32> to vector<16x2xf32>
    %164 = arith.addf %162, %163 : vector<16x2xf32>
    %165 = arith.negf %164 : vector<16x2xf32>
    %166 = math.exp %165 : vector<16x2xf32>
    %cst_85 = arith.constant 1.000000e+00 : f32
    %167 = vector.broadcast %cst_85 : f32 to vector<16x2xf32>
    %168 = arith.addf %167, %166 : vector<16x2xf32>
    %169 = arith.divf %167, %168 : vector<16x2xf32>
    %c0_86 = arith.constant 0 : index
    %c0_87 = arith.constant 0 : index
    %170 = vector.load %arg18[%c0_86, %c0_87] : memref<2x512xf32, #tpu.memory_space<vmem>>, vector<2x512xf32>
    %cst_88 = arith.constant dense<0.000000e+00> : vector<16x512xf32>
    %171 = tpu.matmul %169, %170, %cst_88 {dimension_numbers = #tpu.dot_dimension_numbers<[1], [0], [0], [1], [0, 0, 1, 1], [], []>} : vector<16x2xf32>, vector<2x512xf32>, vector<16x512xf32> -> vector<16x512xf32>
    %172 = arith.mulf %138, %171 : vector<16x512xf32>
    %cst_89 = arith.constant dense<0.000000e+00> : vector<512xf32>
    %173 = vector.multi_reduction <add>, %172, %cst_89 [0] : vector<16x512xf32> to vector<512xf32>
    %174 = vector.shape_cast %173 : vector<512xf32> to vector<1x512xf32>
    %cst_90 = arith.constant 1.600000e+01 : f32
    %175 = vector.broadcast %cst_90 : f32 to vector<1x512xf32>
    %176 = arith.divf %174, %175 : vector<1x512xf32>
    %cst_91 = arith.constant dense<0xFF800000> : vector<512xf32>
    %177 = vector.multi_reduction <maximumf>, %172, %cst_91 [0] : vector<16x512xf32> to vector<512xf32>
    %178 = vector.shape_cast %177 : vector<512xf32> to vector<1x512xf32>
    %179 = tpu.concatenate %176, %178 in 0 : vector<1x512xf32>, vector<1x512xf32> -> vector<2x512xf32>
    %c48_i32 = arith.constant 48 : i32
    %180 = tpu.dynamic_rotate %179 by %c48_i32 dim 1 : vector<2x512xf32>, i32 -> vector<2x512xf32>
    %c0_92 = arith.constant 0 : index
    %c0_93 = arith.constant 0 : index
    %181 = vector.load %arg16[%c0_92, %c0_93] : memref<7x512xf32, #tpu.memory_space<vmem>>, vector<1x512xf32>
    %182 = vector.broadcast %181 : vector<1x512xf32> to vector<2x512xf32>
    %183 = arith.mulf %180, %182 : vector<2x512xf32>
    %c32_i32 = arith.constant 32 : i32
    %184 = tpu.dynamic_rotate %179 by %c32_i32 dim 1 : vector<2x512xf32>, i32 -> vector<2x512xf32>
    %c1_94 = arith.constant 1 : index
    %c0_95 = arith.constant 0 : index
    %185 = vector.load %arg16[%c1_94, %c0_95] : memref<7x512xf32, #tpu.memory_space<vmem>>, vector<1x512xf32>
    %186 = vector.broadcast %185 : vector<1x512xf32> to vector<2x512xf32>
    %187 = arith.mulf %184, %186 : vector<2x512xf32>
    %c16_i32_96 = arith.constant 16 : i32
    %188 = tpu.dynamic_rotate %179 by %c16_i32_96 dim 1 : vector<2x512xf32>, i32 -> vector<2x512xf32>
    %c2_97 = arith.constant 2 : index
    %c0_98 = arith.constant 0 : index
    %189 = vector.load %arg16[%c2_97, %c0_98] : memref<7x512xf32, #tpu.memory_space<vmem>>, vector<1x512xf32>
    %190 = vector.broadcast %189 : vector<1x512xf32> to vector<2x512xf32>
    %191 = arith.mulf %188, %190 : vector<2x512xf32>
    %c496_i32_99 = arith.constant 496 : i32
    %192 = tpu.dynamic_rotate %179 by %c496_i32_99 dim 1 : vector<2x512xf32>, i32 -> vector<2x512xf32>
    %c4 = arith.constant 4 : index
    %c0_100 = arith.constant 0 : index
    %193 = vector.load %arg16[%c4, %c0_100] : memref<7x512xf32, #tpu.memory_space<vmem>>, vector<1x512xf32>
    %194 = vector.broadcast %193 : vector<1x512xf32> to vector<2x512xf32>
    %195 = arith.mulf %192, %194 : vector<2x512xf32>
    %c480_i32 = arith.constant 480 : i32
    %196 = tpu.dynamic_rotate %179 by %c480_i32 dim 1 : vector<2x512xf32>, i32 -> vector<2x512xf32>
    %c5_101 = arith.constant 5 : index
    %c0_102 = arith.constant 0 : index
    %197 = vector.load %arg16[%c5_101, %c0_102] : memref<7x512xf32, #tpu.memory_space<vmem>>, vector<1x512xf32>
    %198 = vector.broadcast %197 : vector<1x512xf32> to vector<2x512xf32>
    %199 = arith.mulf %196, %198 : vector<2x512xf32>
    %c464_i32 = arith.constant 464 : i32
    %200 = tpu.dynamic_rotate %179 by %c464_i32 dim 1 : vector<2x512xf32>, i32 -> vector<2x512xf32>
    %c6_103 = arith.constant 6 : index
    %c0_104 = arith.constant 0 : index
    %201 = vector.load %arg16[%c6_103, %c0_104] : memref<7x512xf32, #tpu.memory_space<vmem>>, vector<1x512xf32>
    %202 = vector.broadcast %201 : vector<1x512xf32> to vector<2x512xf32>
    %203 = arith.mulf %200, %202 : vector<2x512xf32>
    %204 = tpu.concatenate %183, %187, %191, %179, %195, %199, %203 in 0 : vector<2x512xf32>, vector<2x512xf32>, vector<2x512xf32>, vector<2x512xf32>, vector<2x512xf32>, vector<2x512xf32>, vector<2x512xf32> -> vector<14x512xf32>
    %c3_i32 = arith.constant 3 : i32
    %205 = tpu.dynamic_rotate %204 by %c3_i32 dim 1 : vector<14x512xf32>, i32 -> vector<14x512xf32>
    %c0_105 = arith.constant 0 : index
    %c0_106 = arith.constant 0 : index
    %206 = vector.load %arg17[%c0_105, %c0_106] : memref<7x512xf32, #tpu.memory_space<vmem>>, vector<1x512xf32>
    %207 = vector.broadcast %206 : vector<1x512xf32> to vector<14x512xf32>
    %208 = arith.mulf %205, %207 : vector<14x512xf32>
    %c2_i32 = arith.constant 2 : i32
    %209 = tpu.dynamic_rotate %204 by %c2_i32 dim 1 : vector<14x512xf32>, i32 -> vector<14x512xf32>
    %c1_107 = arith.constant 1 : index
    %c0_108 = arith.constant 0 : index
    %210 = vector.load %arg17[%c1_107, %c0_108] : memref<7x512xf32, #tpu.memory_space<vmem>>, vector<1x512xf32>
    %211 = vector.broadcast %210 : vector<1x512xf32> to vector<14x512xf32>
    %212 = arith.mulf %209, %211 : vector<14x512xf32>
    %c1_i32_109 = arith.constant 1 : i32
    %213 = tpu.dynamic_rotate %204 by %c1_i32_109 dim 1 : vector<14x512xf32>, i32 -> vector<14x512xf32>
    %c2_110 = arith.constant 2 : index
    %c0_111 = arith.constant 0 : index
    %214 = vector.load %arg17[%c2_110, %c0_111] : memref<7x512xf32, #tpu.memory_space<vmem>>, vector<1x512xf32>
    %215 = vector.broadcast %214 : vector<1x512xf32> to vector<14x512xf32>
    %216 = arith.mulf %213, %215 : vector<14x512xf32>
    %c511_i32_112 = arith.constant 511 : i32
    %217 = tpu.dynamic_rotate %204 by %c511_i32_112 dim 1 : vector<14x512xf32>, i32 -> vector<14x512xf32>
    %c4_113 = arith.constant 4 : index
    %c0_114 = arith.constant 0 : index
    %218 = vector.load %arg17[%c4_113, %c0_114] : memref<7x512xf32, #tpu.memory_space<vmem>>, vector<1x512xf32>
    %219 = vector.broadcast %218 : vector<1x512xf32> to vector<14x512xf32>
    %220 = arith.mulf %217, %219 : vector<14x512xf32>
    %c510_i32 = arith.constant 510 : i32
    %221 = tpu.dynamic_rotate %204 by %c510_i32 dim 1 : vector<14x512xf32>, i32 -> vector<14x512xf32>
    %c5_115 = arith.constant 5 : index
    %c0_116 = arith.constant 0 : index
    %222 = vector.load %arg17[%c5_115, %c0_116] : memref<7x512xf32, #tpu.memory_space<vmem>>, vector<1x512xf32>
    %223 = vector.broadcast %222 : vector<1x512xf32> to vector<14x512xf32>
    %224 = arith.mulf %221, %223 : vector<14x512xf32>
    %c509_i32 = arith.constant 509 : i32
    %225 = tpu.dynamic_rotate %204 by %c509_i32 dim 1 : vector<14x512xf32>, i32 -> vector<14x512xf32>
    %c6_117 = arith.constant 6 : index
    %c0_118 = arith.constant 0 : index
    %226 = vector.load %arg17[%c6_117, %c0_118] : memref<7x512xf32, #tpu.memory_space<vmem>>, vector<1x512xf32>
    %227 = vector.broadcast %226 : vector<1x512xf32> to vector<14x512xf32>
    %228 = arith.mulf %225, %227 : vector<14x512xf32>
    %229 = tpu.concatenate %208, %212, %216, %204, %220, %224, %228 in 0 : vector<14x512xf32>, vector<14x512xf32>, vector<14x512xf32>, vector<14x512xf32>, vector<14x512xf32>, vector<14x512xf32>, vector<14x512xf32> -> vector<98x512xf32>
    %c0_119 = arith.constant 0 : index
    %c0_120 = arith.constant 0 : index
    %230 = vector.load %arg12[%c0_119, %c0_120] : memref<1x98xf32, #tpu.memory_space<vmem>>, vector<1x98xf32>
    %cst_121 = arith.constant dense<0.000000e+00> : vector<1x512xf32>
    %231 = tpu.matmul %230, %229, %cst_121 {dimension_numbers = #tpu.dot_dimension_numbers<[1], [0], [0], [1], [0, 0, 1, 1], [], []>} : vector<1x98xf32>, vector<98x512xf32>, vector<1x512xf32> -> vector<1x512xf32>
    %232 = arith.negf %231 : vector<1x512xf32>
    %233 = math.exp %232 : vector<1x512xf32>
    %cst_122 = arith.constant 1.000000e+00 : f32
    %234 = vector.broadcast %cst_122 : f32 to vector<1x512xf32>
    %235 = arith.addf %234, %233 : vector<1x512xf32>
    %236 = arith.divf %234, %235 : vector<1x512xf32>
    %237 = vector.broadcast %236 : vector<1x512xf32> to vector<16x512xf32>
    %238 = arith.mulf %172, %237 : vector<16x512xf32>
    %c8_123 = arith.constant 8 : index
    %c0_124 = arith.constant 0 : index
    %239 = vector.load %arg20[%c8_123, %c0_124] : memref<24x512xf32, #tpu.memory_space<vmem>>, vector<16x512xf32>
    %240 = arith.addf %238, %239 : vector<16x512xf32>
    %241 = arith.mulf %240, %240 : vector<16x512xf32>
    %242 = tpu.concatenate %240, %241 in 0 : vector<16x512xf32>, vector<16x512xf32> -> vector<32x512xf32>
    %cst_125 = arith.constant dense<0.000000e+00> : vector<32xf32>
    %243 = vector.multi_reduction <add>, %242, %cst_125 [1] : vector<32x512xf32> to vector<32xf32>
    %244 = vector.shape_cast %243 : vector<32xf32> to vector<32x1xf32>
    %245 = vector.extract_strided_slice %244 {offsets = [0, 0], sizes = [16, 1], strides = [1, 1]} : vector<32x1xf32> to vector<16x1xf32>
    %cst_126 = arith.constant 0.001953125 : f32
    %246 = vector.broadcast %cst_126 : f32 to vector<16x1xf32>
    %247 = arith.mulf %245, %246 : vector<16x1xf32>
    %248 = vector.extract_strided_slice %244 {offsets = [16, 0], sizes = [16, 1], strides = [1, 1]} : vector<32x1xf32> to vector<16x1xf32>
    %cst_127 = arith.constant 0.001953125 : f32
    %249 = vector.broadcast %cst_127 : f32 to vector<16x1xf32>
    %250 = arith.mulf %248, %249 : vector<16x1xf32>
    %251 = arith.mulf %247, %247 : vector<16x1xf32>
    %252 = arith.subf %250, %251 : vector<16x1xf32>
    %cst_128 = arith.constant 0.000000e+00 : f32
    %253 = vector.broadcast %cst_128 : f32 to vector<16x1xf32>
    %254 = arith.maximumf %252, %253 : vector<16x1xf32>
    %c0_129 = arith.constant 0 : index
    %c0_130 = arith.constant 0 : index
    %255 = vector.load %arg13[%c0_129, %c0_130] : memref<16x1xf32, #tpu.memory_space<vmem>>, vector<16x1xf32>
    %cst_131 = arith.constant 9.99999974E-6 : f32
    %256 = vector.broadcast %cst_131 : f32 to vector<16x1xf32>
    %257 = arith.addf %254, %256 : vector<16x1xf32>
    %258 = math.rsqrt %257 : vector<16x1xf32>
    %259 = arith.mulf %255, %258 : vector<16x1xf32>
    %c0_132 = arith.constant 0 : index
    %c0_133 = arith.constant 0 : index
    %260 = vector.load %arg14[%c0_132, %c0_133] : memref<16x1xf32, #tpu.memory_space<vmem>>, vector<16x1xf32>
    %261 = arith.mulf %247, %259 : vector<16x1xf32>
    %262 = arith.subf %260, %261 : vector<16x1xf32>
    %263 = vector.broadcast %259 : vector<16x1xf32> to vector<16x512xf32>
    %264 = arith.mulf %240, %263 : vector<16x512xf32>
    %265 = vector.broadcast %262 : vector<16x1xf32> to vector<16x512xf32>
    %266 = arith.addf %264, %265 : vector<16x512xf32>
    %cst_134 = arith.constant 0.000000e+00 : f32
    %267 = vector.broadcast %cst_134 : f32 to vector<16x512xf32>
    %268 = arith.maximumf %266, %267 : vector<16x512xf32>
    %269 = vector.extract_strided_slice %268 {offsets = [0, 0], sizes = [16, 256], strides = [1, 1]} : vector<16x512xf32> to vector<16x256xf32>
    %c0_135 = arith.constant 0 : index
    %c0_136 = arith.constant 0 : index
    %c0_137 = arith.constant 0 : index
    %270 = vector.load %arg19[%c0_135, %c0_136, %c0_137] : memref<2x16x256xf32, #tpu.memory_space<vmem>>, vector<1x16x256xf32>
    %271 = vector.shape_cast %270 : vector<1x16x256xf32> to vector<16x256xf32>
    %272 = vector.shape_cast %269 : vector<16x256xf32> to vector<1x16x256xf32>
    tpu.vector_store %arg19[%c0_135, %c0_136, %c0_137], %272 {strides = array<i32>} : memref<2x16x256xf32, #tpu.memory_space<vmem>>, vector<1x16x256xf32>,
    %273 = vector.extract_strided_slice %268 {offsets = [0, 256], sizes = [16, 256], strides = [1, 1]} : vector<16x512xf32> to vector<16x256xf32>
    %c1_138 = arith.constant 1 : index
    %c0_139 = arith.constant 0 : index
    %c0_140 = arith.constant 0 : index
    %274 = vector.load %arg19[%c1_138, %c0_139, %c0_140] : memref<2x16x256xf32, #tpu.memory_space<vmem>>, vector<1x16x256xf32>
    %275 = vector.shape_cast %274 : vector<1x16x256xf32> to vector<16x256xf32>
    %276 = vector.shape_cast %273 : vector<16x256xf32> to vector<1x16x256xf32>
    tpu.vector_store %arg19[%c1_138, %c0_139, %c0_140], %276 {strides = array<i32>} : memref<2x16x256xf32, #tpu.memory_space<vmem>>, vector<1x16x256xf32>,
    return
  }
}

</mosaic_0001>

<bundles_post_ra>
// kernel: tpu_custom_call.1
= control target key start
LH: loop header
LB: loop body
LE: loop exit
PB: predicated region body
PF: predicated region fallthrough
CT: control target
= control target key end

     0   :  { %s3849_s0 = inlined_call_operand.vmem [shape: f32[2,4,256], index: 0, kind: input, shape index: {}]   ;;  %s3850_s1 = inlined_call_operand.vmem [shape: f32[24,4], index: 1, kind: input, shape index: {}]   ;;  %s3851_s2 = inlined_call_operand.vmem [shape: f32[8,1], index: 2, kind: input, shape index: {}]   ;;  %s3852_s3 = inlined_call_operand.vmem [shape: f32[8,1], index: 3, kind: input, shape index: {}]   ;;  %s3853_s4 = inlined_call_operand.vmem [shape: f32[8,72], index: 4, kind: input, shape index: {}]   ;;  %s3854_s5 = inlined_call_operand.vmem [shape: f32[8,1], index: 5, kind: input, shape index: {}]   ;;  %s3855_s6 = inlined_call_operand.vmem [shape: f32[8,1], index: 6, kind: input, shape index: {}]   ;;  %s3856_s7 = inlined_call_operand.vmem [shape: f32[16,8], index: 7, kind: input, shape index: {}]   ;;  %s3857_s8 = inlined_call_operand.vmem [shape: f32[16,1], index: 8, kind: input, shape index: {}]   ;;  %s3858_s9 = inlined_call_operand.vmem [shape: f32[16,1], index: 9, kind: input, shape index: {}]   ;;  %s3859_s10 = inlined_call_operand.vmem [shape: f32[4,16], index: 10, kind: input, shape index: {}]   ;;  %s3860_s11 = inlined_call_operand.vmem [shape: f32[16,4], index: 11, kind: input, shape index: {}]   ;;  %s3861_s12 = inlined_call_operand.vmem [shape: f32[1,98], index: 12, kind: input, shape index: {}]   ;;  %s3862_s13 = inlined_call_operand.vmem [shape: f32[16,1], index: 13, kind: input, shape index: {}]   ;;  %s3863_s14 = inlined_call_operand.vmem [shape: f32[16,1], index: 14, kind: input, shape index: {}]   ;;  %s3864_s15 = inlined_call_operand.hbm [shape: f32[9,512], index: 15, kind: input, shape index: {}]   ;;  %s3865_s16 = inlined_call_operand.vmem [shape: f32[7,512], index: 16, kind: input, shape index: {}]   ;;  %s3866_s17 = inlined_call_operand.vmem [shape: f32[7,512], index: 17, kind: input, shape index: {}]   ;;  %s3867_s18 = inlined_call_operand.vmem [shape: f32[2,512], index: 18, kind: input, shape index: {}]   ;;  %s3868_s19 = inlined_call_operand.hbm [shape: f32[2,16,256], index: 19, kind: output, shape index: {}]  }
   0x1   :  { %3881 = sst [smem:[#allocation20_spill]] %s3849_s0 }
   0x2   :  { %3882 = sst [smem:[#allocation21_spill]] %s3850_s1 }
   0x3   :  { %3883 = sst [smem:[#allocation22_spill]] %s3851_s2 }
   0x4   :  { %3884 = sst [smem:[#allocation23_spill]] %s3852_s3 }
   0x5   :  { %24 = vsyncpa [#allocation5], 0 }
   0x6   :  { %25 = vsyncpa [#allocation6], 0  ;;  %s60_s20 = sshll.u32 %s3864_s15, 4  ;;  %s2499_s21 = smov [#allocation4]   ;;  %s61_s20 = int_to_ptr.hbm [resolvable:$true] %s60_s20 }
   0x7   :  { %s62_s1 = sshll.u32 %s2499_s21, 4  ;;  %s2500_s22 = smov 512   ;;  %s63_s1 = int_to_ptr.vmem [resolvable:$true] %s62_s1 }
   0x8   :  { %s2501_s2 = smov 32  }
   0x9   :  { %68 = dma.hbm_to_vmem [thread:$0]  %s61_s20, 1024, %s63_s1, [#allocation5], %s2500_s22, %s2500_s22, %s2501_s2  }
   0xa   :  { %2495 = dma.done.wait [#allocation5], 1024  }
   0xb   :  { %2496 = vsyncadd [#allocation5], 4294966272  ;;  %s3885_s25 = sld [smem:[#allocation20_spill]]  ;;  %vm97_vm0 = vcmask 1043456   ;;  %vm87_vm1 = vcmask 31744   ;;  %v1099_v5 = vld [vmem:[%s3867_s18] sm:$0xff]  ;;  %v309_v57 = vlaneseq }
   0xc   :  { %s3886_s28 = sld [smem:[#allocation21_spill]]  ;;  %v2502_v22 = vmov 0   ;;  %s2503_s23 = smov 112   ;;  %v544_v60 = vld [vmem:[#allocation4 + $0x20] ss:$8 sm:$0xf] }
   0xd   :  { %2404 = vset.pattern.permute.xlu1 %v2502_v22  ;;  %2406 = vset.pattern.permute.xlu2 %v2502_v22  ;;  %s3887_s20 = sld [smem:[#allocation22_spill]]  ;;  %s2504_s24 = smov 111   ;;  %v2708_v59 = vand.u32 127, %v309_v57  ;;  %v548_v61 = vperm.slane %v544_v60, 2  ;;  %vm599_vm13 = vcmask 588800  }
   0xe   :  { %2405 = vset.pattern.permute.xlu0 %v2502_v22  ;;  %s3888_s22 = sld [smem:[#allocation23_spill]]  ;;  %s2506_s3 = smov 127  }
   0xf   :  { %s2507_s26 = smov 1   ;;  %s2508_s15 = smov 15   ;;  %vm538_vm5 = vcmp.lt.s32.totalorder %v2708_v59, 111  ;;  %vm506_vm6 = vcmp.lt.s32.totalorder %v2708_v59, 112  ;;  %vm474_vm7 = vcmp.lt.s32.totalorder %v2708_v59, 113  ;;  %vm442_vm8 = vcmp.lt.s32.totalorder %v2708_v59, 127 }
  0x10   :  { %s2509_s27 = smov 16   ;;  %s2510_s29 = smov 17   ;;  %vm406_vm9 = vcmp.lt.s32.totalorder %v2708_v59, 1  ;;  %vm374_vm10 = vcmp.lt.s32.totalorder %v2708_v59, 15  ;;  %vm342_vm11 = vcmp.lt.s32.totalorder %v2708_v59, 16  ;;  %vm311_vm12 = vcmp.lt.s32.totalorder %v2708_v59, 17 }
  0x11   :  { %v82_v0 = vld [vmem:[%s3885_s25] sm:$0xff]  ;;  %v2319_v1 = vld [vmem:[%s3885_s25 + $0x8] sm:$0xff]  ;;  %s2505_s25 = smov 113  }
  0x12   :  { %84 = vst [vmem:[#allocation1] ss:$2 sm:$0xff] %v82_v0  ;;  %v160_v4 = vld [vmem:[%s3886_s28] sm:$0xff] }
  0x13   :  { %v263_v36 = vld [vmem:[%s3887_s20] sm:$0xff] }
  0x14   :  { %v276_v41 = vld [vmem:[%s3888_s22] sm:$0xff] }
  0x19   :  { %v85_v2 = vld.sshfl [vmem:[#allocation1] sm:$0xff pattern:$0x75316420]  ;;  %v86_v3 = vld.sshfl [vmem:[#allocation1 + $0x8] sm:$0xff pattern:$0x75316420] }
  0x1a   :  { %166 = vst [vmem:[#allocation1] ss:$2 sm:$0xff] %v2319_v1  ;;  %2311 = vmatpush.msk.msra.mxu0 %vm97_vm0, %v85_v2  ;;  %2315 = vmatpush.msk.msra.mxu1 %vm97_vm0, %v86_v3  ;;  %v549_v1 = vperm.slane %v544_v60, 3 }
  0x1b   :  { %2312 = vmatmul.msk.f32.vlgmr.msra.gmra.mxu0 %vm87_vm1, %v160_v4  ;;  %2316 = vmatmul.msk.f32.vlgmr.msra.gmra.mxu1 %vm87_vm1, %v160_v4 }
  0x21   :  { %v167_v6 = vld.sshfl [vmem:[#allocation1] sm:$0xff pattern:$0x75316420]  ;;  %v168_v7 = vld.sshfl [vmem:[#allocation1 + $0x8] sm:$0xff pattern:$0x75316420] }
  0x22   :  { %2320 = vmatpush.msk.msra.mxu2 %vm97_vm0, %v167_v6  ;;  %2324 = vmatpush.msk.msra.mxu3 %vm97_vm0, %v168_v7  ;;  %1101 = vst [vmem:[#allocation1] ss:$4 sm:$0xff] %v1099_v5  ;;  %v512_v5 = vld [vmem:[#allocation4 + $0x7] ss:$8 sm:$0xf] }
  0x23   :  { %2321 = vmatmul.msk.f32.vlgmr.msra.gmra.mxu2 %vm87_vm1, %v160_v4  ;;  %2325 = vmatmul.msk.f32.vlgmr.msra.gmra.mxu3 %vm87_vm1, %v160_v4  ;;  %v516_v6 = vperm.slane %v512_v5, 2 }
  0x98   :  { %v119_v8 = vpop.f32.mrf.mxu0  ;;  %v145_v9 = vpop.f32.mrf.mxu1 }
  0x99   :  { %v248_v10 = vadd.f32 %v145_v9, %v119_v8  ;;  %v244_v11 = vmul.f32 %v119_v8, %v119_v8  ;;  %v245_v12 = vmul.f32 %v145_v9, %v145_v9 }
  0x9b   :  { %v253_v18 = vadd.f32 %v245_v12, %v244_v11  ;;  %v480_v12 = vld [vmem:[#allocation4 + $0x6] ss:$8 sm:$0xf] }
  0xa6   :  { %v199_v13 = vpop.f32.mrf.mxu2  ;;  %v225_v14 = vpop.f32.mrf.mxu3 }
  0xa7   :  { %v249_v15 = vadd.f32 %v248_v10, %v199_v13  ;;  %v246_v16 = vmul.f32 %v199_v13, %v199_v13  ;;  %v247_v19 = vmul.f32 %v225_v14, %v225_v14 }
  0xa9   :  { %v250_v17 = vadd.f32 %v249_v15, %v225_v14  ;;  %v254_v20 = vadd.f32 %v253_v18, %v246_v16  ;;  %v547_v15 = vperm.slane %v544_v60, 1 }
  0xab   :  { %251 = vadd.xlane.f32.xlu0 %v250_v17  ;;  %v255_v21 = vadd.f32 %v254_v20, %v247_v19 }
  0xb3   :  { %256 = vadd.xlane.f32.xlu0 %v255_v21 }
 0x11e   :  { %v252_v23 = vpop.xlane.xlu0 %251 }
 0x11f   :  { %v258_v24 = vmul.f32 0.001953125, %v252_v23 }
 0x121   :  { %v260_v26 = vmul.f32 %v258_v24, %v258_v24 }
 0x126   :  { %v257_v25 = vpop.xlane.xlu0 %256 }
 0x127   :  { %v259_v27 = vmul.f32 0.001953125, %v257_v25  ;;  %v514_v25 = vperm.slane %v512_v5, 0 }
 0x129   :  { %v261_v28 = vsub.f32 %v259_v27, %v260_v26  ;;  %v515_v26 = vperm.slane %v512_v5, 1  ;;  %v517_v27 = vperm.slane %v512_v5, 3 }
 0x12b   :  { %v262_v29 = vmax.f32 %v261_v28, 0.0 }
 0x12d   :  { %v264_v30 = vadd.f32 1e-05, %v262_v29 }
 0x12f   :  { %2407 = vrsqrt.f32 %v264_v30  ;;  %vm271_vm3 = vweird.f32 %v264_v30 }
 0x135   :  { %v2408_v31 = vpop.eup %2407 }
 0x136   :  { %v266_v32 = vmul.f32 %v2408_v31, %v264_v30  ;;  %vm272_vm2 = vweird.f32 %v2408_v31 }
 0x137   :  { %vm273_vm4 = vmor %vm271_vm3, %vm272_vm2  ;;  %vm742_vm3 = vcmask 64512  }
 0x138   :  { %v267_v33 = vmul.f32 %v2408_v31, %v266_v32 }
 0x13a   :  { %v268_v34 = vmul.f32 0.5, %v267_v33 }
 0x13c   :  { %v269_v35 = vsub.f32 1.5, %v268_v34  ;;  %v485_v34 = vperm.slane %v480_v12, 3 }
 0x13e   :  { %v270_v37 = vmul.f32 %v2408_v31, %v269_v35 }
 0x140   :  { %v274_v38 = vsel %vm273_vm4, %v2408_v31, %v270_v37 }
 0x141   :  { %v275_v39 = vmul.f32 %v274_v38, %v263_v36 }
 0x143   :  { %281 = vperm.xlu1 %2404, %v275_v39   ;;  %v277_v40 = vmul.f32 %v275_v39, %v258_v24  ;;  %v448_v39 = vld [vmem:[#allocation4 + $0x5] ss:$8 sm:$0xf] }
 0x144   :  { %v453_v57 = vperm.slane %v448_v39, 3 }
 0x145   :  { %v278_v42 = vsub.f32 %v276_v41, %v277_v40  ;;  %v452_v41 = vperm.slane %v448_v39, 2 }
 0x14b   :  { %290 = vperm.xlu1 %2404, %v278_v42   ;;  %v482_v42 = vperm.slane %v480_v12, 0 }
 0x1b5   :  { %v282_v43 = vpop.permute.xlu1 %281 }
 0x1b6   :  { %v286_v44 = vmul.f32 %v282_v43, %v199_v13  ;;  %v287_v45 = vmul.f32 %v282_v43, %v225_v14  ;;  %v284_v51 = vmul.f32 %v282_v43, %v119_v8  ;;  %v285_v52 = vmul.f32 %v282_v43, %v145_v9 }
 0x1b7   :  { %v484_v13 = vperm.slane %v480_v12, 2  ;;  %v546_v14 = vperm.slane %v544_v60, 0  ;;  %v483_v43 = vperm.slane %v480_v12, 1  ;;  %v451_v60 = vperm.slane %v448_v39, 1 }
 0x1bd   :  { %v291_v46 = vpop.permute.xlu1 %290 }
 0x1be   :  { %v295_v47 = vadd.f32 %v291_v46, %v286_v44  ;;  %v296_v48 = vadd.f32 %v291_v46, %v287_v45  ;;  %v293_v53 = vadd.f32 %v291_v46, %v284_v51  ;;  %v294_v54 = vadd.f32 %v291_v46, %v285_v52 }
 0x1c0   :  { %v2652_v49 = vmax.f32 %v295_v47, 0.0  ;;  %v2654_v50 = vmax.f32 %v296_v48, 0.0  ;;  %v2665_v55 = vmax.f32 %v293_v53, 0.0  ;;  %v2667_v56 = vmax.f32 %v294_v54, 0.0 }
 0x1c2   :  { %504 = vrot.lane.b32.xlu1 %v2654_v50, %s2503_s23  ;;  %502 = vrot.lane.b32.xlu0 %v2652_v49, %s2503_s23 }
 0x1c3   :  { %534 = vrot.lane.b32.xlu2 %v2652_v49, %s2504_s24 }
 0x1ca   :  { %470 = vrot.lane.b32.xlu1 %v2652_v49, %s2505_s25  ;;  %438 = vrot.lane.b32.xlu0 %v2652_v49, %s2506_s3 }
 0x1cb   :  { %536 = vrot.lane.b32.xlu2 %v2654_v50, %s2504_s24 }
 0x1d2   :  { %500 = vrot.lane.b32.xlu0 %v2667_v56, %s2503_s23  ;;  %498 = vrot.lane.b32.xlu1 %v2665_v55, %s2503_s23 }
 0x1d3   :  { %530 = vrot.lane.b32.xlu2 %v2665_v55, %s2504_s24 }
 0x1da   :  { %400 = vrot.lane.b32.xlu0 %v2667_v56, %s2507_s26  ;;  %440 = vrot.lane.b32.xlu1 %v2654_v50, %s2506_s3 }
 0x1db   :  { %472 = vrot.lane.b32.xlu2 %v2654_v50, %s2505_s25 }
 0x1e2   :  { %368 = vrot.lane.b32.xlu0 %v2667_v56, %s2508_s15  ;;  %434 = vrot.lane.b32.xlu1 %v2665_v55, %s2506_s3 }
 0x1e3   :  { %532 = vrot.lane.b32.xlu2 %v2667_v56, %s2504_s24 }
 0x1ea   :  { %336 = vrot.lane.b32.xlu0 %v2667_v56, %s2509_s27  ;;  %402 = vrot.lane.b32.xlu1 %v2652_v49, %s2507_s26 }
 0x1eb   :  { %466 = vrot.lane.b32.xlu2 %v2665_v55, %s2505_s25 }
 0x1f2   :  { %398 = vrot.lane.b32.xlu0 %v2665_v55, %s2507_s26  ;;  %370 = vrot.lane.b32.xlu1 %v2652_v49, %s2508_s15 }
 0x1f3   :  { %468 = vrot.lane.b32.xlu2 %v2667_v56, %s2505_s25  ;;  %s2516_s25 = smov 48  }
 0x1fa   :  { %340 = vrot.lane.b32.xlu0 %v2654_v50, %s2509_s27  ;;  %338 = vrot.lane.b32.xlu1 %v2652_v49, %s2509_s27 }
 0x1fb   :  { %436 = vrot.lane.b32.xlu2 %v2667_v56, %s2506_s3 }
 0x202   :  { %334 = vrot.lane.b32.xlu0 %v2665_v55, %s2509_s27  ;;  %303 = vrot.lane.b32.xlu1 %v2667_v56, %s2510_s29 }
 0x203   :  { %404 = vrot.lane.b32.xlu2 %v2654_v50, %s2507_s26 }
 0x20a   :  { %366 = vrot.lane.b32.xlu1 %v2665_v55, %s2508_s15 }
 0x20b   :  { %372 = vrot.lane.b32.xlu2 %v2654_v50, %s2508_s15 }
 0x212   :  { %301 = vrot.lane.b32.xlu1 %v2665_v55, %s2510_s29 }
 0x213   :  { %305 = vrot.lane.b32.xlu2 %v2652_v49, %s2510_s29 }
 0x21b   :  { %307 = vrot.lane.b32.xlu2 %v2654_v50, %s2510_s29 }
 0x21d   :  { %v535_v58 = vpop.permute.xlu2 %534 }
 0x225   :  { %v537_v62 = vpop.permute.xlu2 %536 }
 0x226   :  { %v539_v63 = vsel %vm538_vm5, %v535_v58, %v537_v62 }
 0x227   :  { %v556_v0 = vmul.f32 %v548_v61, %v539_v63 }
 0x229   :  { %650 = vmatpush.msrb.mxu2 %v556_v0 }
 0x22d   :  { %v531_v2 = vpop.permute.xlu2 %530 }
 0x22e   :  { %v542_v3 = vsel %vm538_vm5, %v537_v62, %v531_v2 }
 0x22f   :  { %v557_v4 = vmul.f32 %v549_v1, %v542_v3  ;;  %v161_v1 = vld [vmem:[%s3886_s28 + $0x8] sm:$0xff] }
 0x230   :  { %2322 = vmatmul.msk.f32.gmra.mxu2 %vm87_vm1, %v161_v1  ;;  %2326 = vmatmul.msk.f32.gmra.mxu3 %vm87_vm1, %v161_v1 }
 0x231   :  { %670 = vmatpush.msrb.mxu3 %v557_v4  ;;  %2313 = vmatmul.msk.f32.gmra.mxu0 %vm87_vm1, %v161_v1 }
 0x232   :  { %2317 = vmatmul.msk.f32.gmra.mxu1 %vm87_vm1, %v161_v1 }
 0x234   :  { %v505_v7 = vpop.permute.xlu1 %504  ;;  %v503_v8 = vpop.permute.xlu0 %502 }
 0x235   :  { %v507_v9 = vsel %vm506_vm6, %v503_v8, %v505_v7  ;;  %v473_v10 = vpop.permute.xlu2 %472 }
 0x236   :  { %v524_v11 = vmul.f32 %v516_v6, %v507_v9  ;;  %v412_v6 = vld [vmem:[#allocation4 + $0x3] ss:$8 sm:$0xf] }
 0x238   :  { %651 = vmatpush.msrb.mxu2 %v524_v11 }
 0x23c   :  { %v471_v16 = vpop.permute.xlu1 %470  ;;  %v439_v17 = vpop.permute.xlu0 %438 }
 0x23d   :  { %v475_v18 = vsel %vm474_vm7, %v471_v16, %v473_v10  ;;  %v533_v19 = vpop.permute.xlu2 %532 }
 0x23e   :  { %v540_v20 = vsel %vm538_vm5, %v533_v19, %v535_v58  ;;  %v541_v21 = vsel %vm538_vm5, %v531_v2, %v533_v19  ;;  %v492_v22 = vmul.f32 %v484_v13, %v475_v18  ;;  %v450_v58 = vperm.slane %v448_v39, 0 }
 0x23f   :  { %v554_v23 = vmul.f32 %v546_v14, %v541_v21  ;;  %v555_v24 = vmul.f32 %v547_v15, %v540_v20  ;;  %v414_v15 = vperm.slane %v412_v6, 0 }
 0x240   :  { %652 = vmatpush.msrb.mxu2 %v492_v22 }
 0x241   :  { %610 = vmatpush.msrb.mxu0 %v554_v23  ;;  %630 = vmatpush.msrb.mxu1 %v555_v24 }
 0x244   :  { %v501_v28 = vpop.permute.xlu0 %500  ;;  %v499_v29 = vpop.permute.xlu1 %498 }
 0x245   :  { %v508_v30 = vsel %vm506_vm6, %v501_v28, %v503_v8  ;;  %v509_v31 = vsel %vm506_vm6, %v499_v29, %v501_v28  ;;  %v510_v32 = vsel %vm506_vm6, %v505_v7, %v499_v29  ;;  %v467_v33 = vpop.permute.xlu2 %466  ;;  %v416_v7 = vperm.slane %v412_v6, 2 }
 0x246   :  { %v478_v35 = vsel %vm474_vm7, %v473_v10, %v467_v33  ;;  %v522_v36 = vmul.f32 %v514_v25, %v509_v31  ;;  %v523_v37 = vmul.f32 %v515_v26, %v508_v30  ;;  %v525_v38 = vmul.f32 %v517_v27, %v510_v32  ;;  %v348_v30 = vld [vmem:[#allocation4 + $0x1] ss:$8 sm:$0xf] }
 0x247   :  { %v493_v40 = vmul.f32 %v485_v34, %v478_v35  ;;  %v417_v8 = vperm.slane %v412_v6, 3  ;;  %v352_v31 = vperm.slane %v348_v30, 2  ;;  %v353_v32 = vperm.slane %v348_v30, 3 }
 0x248   :  { %611 = vmatpush.msrb.mxu0 %v522_v36  ;;  %631 = vmatpush.msrb.mxu1 %v523_v37 }
 0x249   :  { %671 = vmatpush.msrb.mxu3 %v525_v38 }
 0x24b   :  { %672 = vmatpush.msrb.mxu3 %v493_v40  ;;  %v316_v40 = vld [vmem:[#allocation4] ss:$8 sm:$0xf] }
 0x24c   :  { %v2734_v44 = vpop.permute.xlu0 %400  ;;  %v441_v45 = vpop.permute.xlu1 %440 }
 0x24d   :  { %v443_v46 = vsel %vm442_vm8, %v439_v17, %v441_v45  ;;  %v469_v47 = vpop.permute.xlu2 %468 }
 0x24e   :  { %v476_v48 = vsel %vm474_vm7, %v469_v47, %v471_v16  ;;  %v477_v51 = vsel %vm474_vm7, %v467_v33, %v469_v47  ;;  %v460_v52 = vmul.f32 %v452_v41, %v443_v46  ;;  %v415_v16 = vperm.slane %v412_v6, 1 }
 0x24f   :  { %v490_v53 = vmul.f32 %v482_v42, %v477_v51  ;;  %v491_v54 = vmul.f32 %v483_v43, %v476_v48  ;;  %v320_v41 = vperm.slane %v316_v40, 2  ;;  %v321_v42 = vperm.slane %v316_v40, 3  ;;  %v562_v48 = vld [vmem:[%s3853_s4] sm:$0xff] }
 0x250   :  { %653 = vmatpush.msrb.mxu2 %v460_v52  ;;  %v319_v6 = vperm.slane %v316_v40, 1 }
 0x251   :  { %612 = vmatpush.msrb.mxu0 %v490_v53  ;;  %632 = vmatpush.msrb.mxu1 %v491_v54 }
 0x252   :  { %654 = vmatpush.msrb.mxu2 %v2652_v49 }
 0x254   :  { %v2743_v61 = vpop.permute.xlu0 %368  ;;  %v435_v62 = vpop.permute.xlu1 %434 }
 0x255   :  { %v446_v63 = vsel %vm442_vm8, %v441_v45, %v435_v62  ;;  %v437_v0 = vpop.permute.xlu2 %436 }
 0x256   :  { %v444_v2 = vsel %vm442_vm8, %v437_v0, %v439_v17  ;;  %v445_v49 = vsel %vm442_vm8, %v435_v62, %v437_v0  ;;  %v461_v3 = vmul.f32 %v453_v57, %v446_v63 }
 0x257   :  { %v458_v4 = vmul.f32 %v450_v58, %v445_v49  ;;  %v459_v5 = vmul.f32 %v451_v60, %v444_v2  ;;  %v350_v58 = vperm.slane %v348_v30, 0  ;;  %v351_v60 = vperm.slane %v348_v30, 1 }
 0x258   :  { %673 = vmatpush.msrb.mxu3 %v461_v3 }
 0x259   :  { %613 = vmatpush.msrb.mxu0 %v458_v4  ;;  %633 = vmatpush.msrb.mxu1 %v459_v5  ;;  %v318_v5 = vperm.slane %v316_v40, 0 }
 0x25a   :  { %674 = vmatpush.msrb.mxu3 %v2654_v50  ;;  %v162_v50 = vld [vmem:[%s3886_s28 + $0x10] sm:$0xff] }
 0x25b   :  { %614 = vmatpush.msrb.mxu0 %v2665_v55  ;;  %634 = vmatpush.msrb.mxu1 %v2667_v56  ;;  %v2774_v56 = vld [vmem:[#allocation4 + $0x2] ss:$8 sm:$0xf] }
 0x25c   :  { %v2762_v9 = vpop.permute.xlu0 %336  ;;  %v403_v10 = vpop.permute.xlu1 %402  ;;  %2323 = vmatmul.msk.f32.gmra.mxu2 %vm87_vm1, %v162_v50  ;;  %2327 = vmatmul.msk.f32.gmra.mxu3 %vm87_vm1, %v162_v50  ;;  %v384_v17 = vperm.slane %v2774_v56, 2  ;;  %v385_v18 = vperm.slane %v2774_v56, 3  ;;  %v382_v53 = vperm.slane %v2774_v56, 0  ;;  %v383_v54 = vperm.slane %v2774_v56, 1 }
 0x25d   :  { %v408_v11 = vsel %vm406_vm9, %v2734_v44, %v403_v10  ;;  %v405_v12 = vpop.permute.xlu2 %404  ;;  %2314 = vmatmul.msk.f32.gmra.mxu0 %vm87_vm1, %v162_v50  ;;  %2318 = vmatmul.msk.f32.gmra.mxu1 %vm87_vm1, %v162_v50 }
 0x25e   :  { %v407_v13 = vsel %vm406_vm9, %v403_v10, %v405_v12  ;;  %v424_v14 = vmul.f32 %v416_v7, %v408_v11 }
 0x25f   :  { %v425_v55 = vmul.f32 %v417_v8, %v407_v13 }
 0x260   :  { %655 = vmatpush.msrb.mxu2 %v424_v14 }
 0x261   :  { %675 = vmatpush.msrb.mxu3 %v425_v55 }
 0x264   :  { %v399_v19 = vpop.permute.xlu0 %398  ;;  %v371_v20 = vpop.permute.xlu1 %370 }
 0x265   :  { %v409_v21 = vsel %vm406_vm9, %v399_v19, %v2734_v44  ;;  %v410_v22 = vsel %vm406_vm9, %v405_v12, %v399_v19  ;;  %v376_v23 = vsel %vm374_vm10, %v2743_v61, %v371_v20  ;;  %v373_v24 = vpop.permute.xlu2 %372 }
 0x266   :  { %v375_v25 = vsel %vm374_vm10, %v371_v20, %v373_v24  ;;  %v422_v26 = vmul.f32 %v414_v15, %v410_v22  ;;  %v423_v27 = vmul.f32 %v415_v16, %v409_v21  ;;  %v392_v28 = vmul.f32 %v384_v17, %v376_v23 }
 0x267   :  { %v393_v29 = vmul.f32 %v385_v18, %v375_v25 }
 0x268   :  { %615 = vmatpush.msrb.mxu0 %v422_v26  ;;  %635 = vmatpush.msrb.mxu1 %v423_v27 }
 0x269   :  { %656 = vmatpush.msrb.mxu2 %v392_v28  ;;  %676 = vmatpush.msrb.mxu3 %v393_v29 }
 0x26c   :  { %v341_v33 = vpop.permute.xlu0 %340  ;;  %v339_v34 = vpop.permute.xlu1 %338 }
 0x26d   :  { %v343_v35 = vsel %vm342_vm11, %v339_v34, %v341_v33  ;;  %v344_v36 = vsel %vm342_vm11, %v2762_v9, %v339_v34  ;;  %v306_v37 = vpop.permute.xlu2 %305 }
 0x26e   :  { %v360_v38 = vmul.f32 %v352_v31, %v344_v36  ;;  %v361_v39 = vmul.f32 %v353_v32, %v343_v35 }
 0x270   :  { %657 = vmatpush.msrb.mxu2 %v360_v38  ;;  %677 = vmatpush.msrb.mxu3 %v361_v39 }
 0x274   :  { %v304_v43 = vpop.permute.xlu1 %303  ;;  %v335_v52 = vpop.permute.xlu0 %334 }
 0x275   :  { %v313_v44 = vsel %vm311_vm12, %v304_v43, %v306_v37  ;;  %v308_v45 = vpop.permute.xlu2 %307  ;;  %v345_v62 = vsel %vm342_vm11, %v335_v52, %v2762_v9  ;;  %v346_v63 = vsel %vm342_vm11, %v341_v33, %v335_v52 }
 0x276   :  { %v312_v46 = vsel %vm311_vm12, %v306_v37, %v308_v45  ;;  %v328_v47 = vmul.f32 %v320_v41, %v313_v44  ;;  %v358_v3 = vmul.f32 %v350_v58, %v346_v63  ;;  %v359_v4 = vmul.f32 %v351_v60, %v345_v62 }
 0x277   :  { %v329_v51 = vmul.f32 %v321_v42, %v312_v46 }
 0x278   :  { %658 = vmatpush.msrb.mxu2 %v328_v47 }
 0x279   :  { %678 = vmatpush.msrb.mxu3 %v329_v51  ;;  %2330 = vmatmul.msk.f32.vlgmr.msrb.gmra.mxu2 %vm599_vm13, %v562_v48 }
 0x27a   :  { %2331 = vmatmul.msk.f32.vlgmr.msrb.gmra.mxu3 %vm599_vm13, %v562_v48 }
 0x27c   :  { %v367_v57 = vpop.permute.xlu1 %366 }
 0x27d   :  { %v377_v0 = vsel %vm374_vm10, %v367_v57, %v2743_v61  ;;  %v378_v1 = vsel %vm374_vm10, %v373_v24, %v367_v57 }
 0x27e   :  { %v390_v2 = vmul.f32 %v382_v53, %v378_v1  ;;  %v391_v49 = vmul.f32 %v383_v54, %v377_v0 }
 0x280   :  { %616 = vmatpush.msrb.mxu0 %v390_v2  ;;  %636 = vmatpush.msrb.mxu1 %v391_v49 }
 0x282   :  { %617 = vmatpush.msrb.mxu0 %v358_v3  ;;  %637 = vmatpush.msrb.mxu1 %v359_v4 }
 0x284   :  { %v302_v7 = vpop.permute.xlu1 %301 }
 0x285   :  { %v314_v8 = vsel %vm311_vm12, %v302_v7, %v304_v43  ;;  %v315_v61 = vsel %vm311_vm12, %v308_v45, %v302_v7  ;;  %v702_v43 = vld [vmem:[%s3854_s5] sm:$0xff]  ;;  %s2515_s5 = smov 80  }
 0x286   :  { %v326_v9 = vmul.f32 %v318_v5, %v315_v61  ;;  %v327_v10 = vmul.f32 %v319_v6, %v314_v8  ;;  %v740_v5 = vld [vmem:[%s3856_s7] sm:$0xff]  ;;  %v741_v6 = vld [vmem:[%s3856_s7 + $0x8] sm:$0xff] }
 0x288   :  { %618 = vmatpush.msrb.mxu0 %v326_v9  ;;  %638 = vmatpush.msrb.mxu1 %v327_v10 }
 0x289   :  { %2328 = vmatmul.msk.f32.vlgmr.msrb.gmra.mxu0 %vm599_vm13, %v562_v48  ;;  %2329 = vmatmul.msk.f32.vlgmr.msrb.gmra.mxu1 %vm599_vm13, %v562_v48  ;;  %v715_v48 = vld [vmem:[%s3855_s6] sm:$0xff] }
 0x2ae   :  { %v2829_v50 = vpop.f32.mrf.mxu0 }
 0x2af   :  { %v2831_v13 = vpop.f32.mrf.mxu1 }
 0x2b3   :  { %v2825_v11 = vpop.f32.mrf.mxu2  ;;  %v2827_v12 = vpop.f32.mrf.mxu3 }
 0x2b4   :  { %3889 = vst [vmem:[#allocation10_spill] sm:$0xff] %v2825_v11 }
 0x2b5   :  { %3890 = vst [vmem:[#allocation11_spill] sm:$0xff] %v2827_v12 }
 0x2da   :  { %v2837_v56 = vpop.f32.mrf.mxu0  ;;  %v2839_v15 = vpop.f32.mrf.mxu1 }
 0x2db   :  { %3893 = vst [vmem:[#allocation14_spill] sm:$0xff] %v2837_v56 }
 0x2dc   :  { %3894 = vst [vmem:[#allocation15_spill] sm:$0xff] %v2839_v15 }
 0x2df   :  { %v2833_v14 = vpop.f32.mrf.mxu2  ;;  %v2835_v55 = vpop.f32.mrf.mxu3 }
 0x2e0   :  { %3891 = vst [vmem:[#allocation12_spill] sm:$0xff] %v2833_v14 }
 0x2e1   :  { %3892 = vst [vmem:[#allocation13_spill] sm:$0xff] %v2835_v55 }
 0x2fc   :  { %v660_v16 = vpop.f32.mrf.mxu2 }
 0x2fd   :  { %v680_v17 = vpop.f32.mrf.mxu3  ;;  %v685_v23 = vmul.f32 %v660_v16, %v660_v16 }
 0x2fe   :  { %v686_v25 = vmul.f32 %v680_v17, %v680_v17 }
 0x306   :  { %v620_v18 = vpop.f32.mrf.mxu0  ;;  %v640_v19 = vpop.f32.mrf.mxu1 }
 0x307   :  { %v683_v20 = vmul.f32 %v620_v18, %v620_v18  ;;  %v684_v21 = vmul.f32 %v640_v19, %v640_v19  ;;  %v687_v22 = vadd.f32 %v640_v19, %v620_v18 }
 0x309   :  { %v688_v24 = vadd.f32 %v687_v22, %v660_v16  ;;  %v692_v26 = vadd.f32 %v684_v21, %v683_v20 }
 0x30b   :  { %v689_v27 = vadd.f32 %v688_v24, %v680_v17  ;;  %v693_v28 = vadd.f32 %v692_v26, %v685_v23 }
 0x30d   :  { %690 = vadd.xlane.f32.xlu2 %v689_v27  ;;  %v694_v29 = vadd.f32 %v693_v28, %v686_v25 }
 0x30f   :  { %695 = vadd.xlane.f32.xlu0 %v694_v29 }
 0x380   :  { %v691_v30 = vpop.xlane.xlu2 %690 }
 0x381   :  { %v697_v31 = vmul.f32 0.001953125, %v691_v30 }
 0x382   :  { %v696_v32 = vpop.xlane.xlu0 %695 }
 0x383   :  { %v699_v33 = vmul.f32 %v697_v31, %v697_v31  ;;  %v698_v34 = vmul.f32 0.001953125, %v696_v32 }
 0x385   :  { %v700_v35 = vsub.f32 %v698_v34, %v699_v33 }
 0x387   :  { %v701_v36 = vmax.f32 %v700_v35, 0.0 }
 0x389   :  { %v703_v37 = vadd.f32 1e-05, %v701_v36 }
 0x38b   :  { %2409 = vrsqrt.f32 %v703_v37  ;;  %vm710_vm15 = vweird.f32 %v703_v37 }
 0x391   :  { %v2410_v38 = vpop.eup %2409 }
 0x392   :  { %v705_v39 = vmul.f32 %v2410_v38, %v703_v37  ;;  %vm711_vm14 = vweird.f32 %v2410_v38 }
 0x393   :  { %vm712_vm2 = vmor %vm710_vm15, %vm711_vm14  ;;  %vm985_vm15 = vcmask 15360  }
 0x394   :  { %v706_v40 = vmul.f32 %v2410_v38, %v705_v39 }
 0x396   :  { %v707_v41 = vmul.f32 0.5, %v706_v40 }
 0x398   :  { %v708_v42 = vsub.f32 1.5, %v707_v41 }
 0x39a   :  { %v709_v44 = vmul.f32 %v2410_v38, %v708_v42 }
 0x39c   :  { %v713_v45 = vsel %vm712_vm2, %v2410_v38, %v709_v44  ;;  %vm982_vm2 = vcmask 7168  }
 0x39d   :  { %v714_v46 = vmul.f32 %v713_v45, %v702_v43 }
 0x39f   :  { %720 = vperm.xlu1 %2404, %v714_v46   ;;  %v716_v47 = vmul.f32 %v714_v46, %v697_v31 }
 0x3a1   :  { %v717_v51 = vsub.f32 %v715_v48, %v716_v47 }
 0x3a7   :  { %729 = vperm.xlu1 %2404, %v717_v51  }
 0x411   :  { %v721_v52 = vpop.permute.xlu1 %720 }
 0x412   :  { %v723_v53 = vmul.f32 %v721_v52, %v620_v18  ;;  %v724_v54 = vmul.f32 %v721_v52, %v640_v19  ;;  %v725_v57 = vmul.f32 %v721_v52, %v660_v16  ;;  %v726_v58 = vmul.f32 %v721_v52, %v680_v17 }
 0x419   :  { %v730_v60 = vpop.permute.xlu1 %729 }
 0x41a   :  { %v732_v62 = vadd.f32 %v730_v60, %v723_v53  ;;  %v733_v63 = vadd.f32 %v730_v60, %v724_v54  ;;  %v734_v0 = vadd.f32 %v730_v60, %v725_v57  ;;  %v735_v1 = vadd.f32 %v730_v60, %v726_v58 }
 0x41c   :  { %v736_v2 = vmax.f32 %v732_v62, 0.0  ;;  %v737_v49 = vmax.f32 %v733_v63, 0.0  ;;  %v739_v3 = vmax.f32 %v735_v1, 0.0  ;;  %v738_v4 = vmax.f32 %v734_v0, 0.0 }
 0x41e   :  { %764 = vmatpush.msra.mxu0 %v736_v2  ;;  %787 = vmatpush.msra.mxu1 %v737_v49 }
 0x41f   :  { %2380 = vmatpush.msra.mxu2 %v737_v49  ;;  %833 = vmatpush.msra.mxu3 %v739_v3 }
 0x420   :  { %2332 = vmatmul.msk.f32.vlgmr.msra.gmra.mxu0 %vm742_vm3, %v740_v5  ;;  %2335 = vmatmul.msk.f32.vlgmr.msra.gmra.mxu2 %vm742_vm3, %v741_v6 }
 0x421   :  { %810 = vmatpush.msrb.mxu2 %v738_v4  ;;  %2338 = vmatmul.msk.f32.vlgmr.msra.gmra.mxu3 %vm742_vm3, %v740_v5 }
 0x422   :  { %2334 = vmatmul.msk.f32.vlgmr.msra.gmra.mxu1 %vm742_vm3, %v740_v5 }
 0x428   :  { %2333 = vmatmul.msk.f32.gmra.mxu0 %vm742_vm3, %v741_v6  ;;  %2336 = vmatmul.msk.f32.vlgmr.msrb.gmra.mxu2 %vm742_vm3, %v740_v5 }
 0x429   :  { %2339 = vmatmul.msk.f32.gmra.mxu3 %vm742_vm3, %v741_v6 }
 0x430   :  { %2337 = vmatmul.msk.f32.gmra.mxu2 %vm742_vm3, %v741_v6  ;;  %v879_v6 = vld [vmem:[%s3857_s8] sm:$0xff]  ;;  %vm988_vm3 = vcmask 23552  }
 0x49d   :  { %v2853_v7 = vpop.f32.mrf.mxu0 }
 0x49e   :  { %v841_v16 = vmul.f32 %v2853_v7, %v2853_v7 }
 0x49f   :  { %v2857_v61 = vpop.f32.mrf.mxu1 }
 0x4a0   :  { %v849_v10 = vadd.f32 %v2857_v61, %v2853_v7  ;;  %v842_v17 = vmul.f32 %v2857_v61, %v2857_v61 }
 0x4a2   :  { %v859_v23 = vadd.f32 %v842_v17, %v841_v16  ;;  %v880_v17 = vld [vmem:[%s3857_s8 + $0x8] sm:$0xff]  ;;  %s2518_s8 = smov 2  }
 0x4a3   :  { %v2855_v8 = vpop.f32.mrf.mxu2 }
 0x4a4   :  { %v2859_v9 = vpop.f32.mrf.mxu3  ;;  %v846_v26 = vmul.f32 %v2855_v8, %v2855_v8 }
 0x4a5   :  { %v2870_v20 = vpop.f32.mrf.mxu0  ;;  %v844_v28 = vmul.f32 %v2859_v9, %v2859_v9 }
 0x4a6   :  { %v845_v24 = vmul.f32 %v2870_v20, %v2870_v20  ;;  %v854_v27 = vadd.f32 %v2855_v8, %v2870_v20 }
 0x4a8   :  { %v864_v34 = vadd.f32 %v846_v26, %v845_v24  ;;  %v906_v24 = vld [vmem:[%s3858_s9 + $0x8] sm:$0xff] }
 0x4ab   :  { %v2867_v18 = vpop.f32.mrf.mxu2 }
 0x4ac   :  { %v850_v19 = vadd.f32 %v849_v10, %v2867_v18  ;;  %v843_v21 = vmul.f32 %v2867_v18, %v2867_v18  ;;  %v2877_v25 = vpop.f32.mrf.mxu3 }
 0x4ad   :  { %v848_v33 = vmul.f32 %v2877_v25, %v2877_v25 }
 0x4ae   :  { %v851_v22 = vadd.f32 %v850_v19, %v2859_v9  ;;  %v860_v29 = vadd.f32 %v859_v23, %v843_v21 }
 0x4b0   :  { %852 = vadd.xlane.f32.xlu2 %v851_v22  ;;  %v861_v35 = vadd.f32 %v860_v29, %v844_v28  ;;  %v905_v28 = vld [vmem:[%s3858_s9] sm:$0xff]  ;;  %s2519_s9 = smov 3  }
 0x4b3   :  { %v2885_v30 = vpop.f32.mrf.mxu2 }
 0x4b4   :  { %v847_v31 = vmul.f32 %v2885_v30, %v2885_v30  ;;  %v855_v32 = vadd.f32 %v854_v27, %v2885_v30 }
 0x4b6   :  { %v856_v36 = vadd.f32 %v855_v32, %v2877_v25  ;;  %v865_v37 = vadd.f32 %v864_v34, %v847_v31 }
 0x4b8   :  { %862 = vadd.xlane.f32.xlu2 %v861_v35  ;;  %857 = vadd.xlane.f32.xlu1 %v856_v36  ;;  %v866_v38 = vadd.f32 %v865_v37, %v848_v33 }
 0x4ba   :  { %867 = vadd.xlane.f32.xlu0 %v866_v38 }
 0x523   :  { %v853_v39 = vpop.xlane.xlu2 %852 }
 0x524   :  { %v869_v40 = vmul.f32 0.001953125, %v853_v39 }
 0x526   :  { %v873_v43 = vmul.f32 %v869_v40, %v869_v40 }
 0x52b   :  { %v863_v41 = vpop.xlane.xlu2 %862  ;;  %v858_v42 = vpop.xlane.xlu1 %857 }
 0x52c   :  { %v871_v44 = vmul.f32 0.001953125, %v863_v41  ;;  %v870_v45 = vmul.f32 0.001953125, %v858_v42 }
 0x52d   :  { %v868_v46 = vpop.xlane.xlu0 %867 }
 0x52e   :  { %v875_v47 = vsub.f32 %v871_v44, %v873_v43  ;;  %v874_v48 = vmul.f32 %v870_v45, %v870_v45  ;;  %v872_v51 = vmul.f32 0.001953125, %v868_v46 }
 0x530   :  { %v877_v52 = vmax.f32 %v875_v47, 0.0  ;;  %v876_v53 = vsub.f32 %v872_v51, %v874_v48 }
 0x532   :  { %v881_v54 = vadd.f32 1e-05, %v877_v52  ;;  %v878_v57 = vmax.f32 %v876_v53, 0.0 }
 0x534   :  { %2411 = vrsqrt.f32 %v881_v54  ;;  %v882_v58 = vadd.f32 1e-05, %v878_v57  ;;  %vm889_vm5 = vweird.f32 %v881_v54 }
 0x536   :  { %2413 = vrsqrt.f32 %v882_v58  ;;  %vm899_vm12 = vweird.f32 %v882_v58 }
 0x53a   :  { %v2412_v60 = vpop.eup %2411 }
 0x53b   :  { %v884_v62 = vmul.f32 %v2412_v60, %v881_v54  ;;  %vm890_vm4 = vweird.f32 %v2412_v60  ;;  %v2511_v54 = vmov 256.0  }
 0x53c   :  { %v2414_v63 = vpop.eup %2413  ;;  %vm891_vm10 = vmor %vm889_vm5, %vm890_vm4  ;;  %2415 = vrcp.f32 %v2511_v54  ;;  %vm992_vm4 = vcmask 130048   ;;  %vm1112_vm5 = vcmask 1041408  }
 0x53d   :  { %v885_v0 = vmul.f32 %v2412_v60, %v884_v62  ;;  %v894_v1 = vmul.f32 %v2414_v63, %v882_v58  ;;  %vm900_vm7 = vweird.f32 %v2414_v63 }
 0x53e   :  { %vm901_vm13 = vmor %vm899_vm12, %vm900_vm7 }
 0x53f   :  { %v886_v2 = vmul.f32 0.5, %v885_v0  ;;  %v895_v49 = vmul.f32 %v2414_v63, %v894_v1 }
 0x541   :  { %v887_v3 = vsub.f32 1.5, %v886_v2  ;;  %v896_v4 = vmul.f32 0.5, %v895_v49 }
 0x542   :  { %v2416_v57 = vpop.eup %2415 }
 0x543   :  { %v897_v5 = vsub.f32 1.5, %v896_v4  ;;  %v888_v10 = vmul.f32 %v2412_v60, %v887_v3  ;;  %v954_v58 = vmul.f32 256.0, %v2416_v57  ;;  %vm958_vm14 = vweird.f32 %v2416_v57 }
 0x545   :  { %v892_v16 = vsel %vm891_vm10, %v2412_v60, %v888_v10  ;;  %v898_v19 = vmul.f32 %v2414_v63, %v897_v5  ;;  %v955_v60 = vsub.f32 1.0, %v954_v58 }
 0x546   :  { %v903_v21 = vmul.f32 %v892_v16, %v879_v6 }
 0x547   :  { %v902_v22 = vsel %vm901_vm13, %v2414_v63, %v898_v19  ;;  %v956_v63 = vmul.f32 %v2416_v57, %v955_v60 }
 0x548   :  { %913 = vperm.xlu2 %2406, %v903_v21   ;;  %v904_v23 = vmul.f32 %v902_v22, %v880_v17  ;;  %v907_v27 = vmul.f32 %v903_v21, %v869_v40 }
 0x549   :  { %v957_v0 = vadd.f32 %v2416_v57, %v956_v63 }
 0x54a   :  { %918 = vperm.xlu0 %2405, %v904_v23   ;;  %v908_v26 = vmul.f32 %v904_v23, %v870_v45  ;;  %v909_v31 = vsub.f32 %v905_v28, %v907_v27  ;;  %v991_v28 = vld [vmem:[%s3859_s10] sm:$0xf]  ;;  %s2512_s10 = smov 126  }
 0x54b   :  { %v959_v3 = vsel %vm958_vm14, %v2416_v57, %v957_v0 }
 0x54c   :  { %v910_v29 = vsub.f32 %v906_v24, %v908_v26 }
 0x54e   :  { %936 = vperm.xlu1 %2404, %v910_v29  }
 0x550   :  { %931 = vperm.xlu2 %2406, %v909_v31  }
 0x5a2   :  { %v914_v32 = vpop.permute.xlu2 %913 }
 0x5a3   :  { %v921_v33 = vmul.f32 %v914_v32, %v2853_v7  ;;  %v922_v34 = vmul.f32 %v914_v32, %v2857_v61  ;;  %v923_v35 = vmul.f32 %v914_v32, %v2867_v18  ;;  %v924_v36 = vmul.f32 %v914_v32, %v2859_v9 }
 0x5aa   :  { %v932_v37 = vpop.permute.xlu2 %931 }
 0x5ab   :  { %v2909_v38 = vadd.f32 %v932_v37, %v921_v33  ;;  %v2911_v39 = vadd.f32 %v932_v37, %v922_v34  ;;  %v2913_v40 = vadd.f32 %v932_v37, %v923_v35  ;;  %v2915_v41 = vadd.f32 %v932_v37, %v924_v36  ;;  %v1017_v33 = vld [vmem:[%s3860_s11] sm:$0xff]  ;;  %v1018_v34 = vld [vmem:[%s3860_s11 + $0x8] sm:$0xff]  ;;  %s2514_s11 = smov 96  }
 0x5ad   :  { %v962_v42 = vadd.f32 %v2915_v41, %v2913_v40  ;;  %v947_v7 = vadd.f32 %v2911_v39, %v2909_v38  ;;  %v976_v53 = vmax.f32 %v2913_v40, %v2915_v41 }
 0x5af   :  { %963 = vadd.xlane.f32.xlu2 %v962_v42  ;;  %948 = vadd.xlane.f32.xlu0 %v947_v7  ;;  %v1105_v7 = vld.sshfl [vmem:[#allocation1 + $0x18] sm:$0xff pattern:$0x73625140] }
 0x5bc   :  { %v919_v61 = vpop.permute.xlu0 %918 }
 0x5bd   :  { %v925_v9 = vmul.f32 %v919_v61, %v2870_v20  ;;  %v926_v18 = vmul.f32 %v919_v61, %v2855_v8  ;;  %v927_v43 = vmul.f32 %v919_v61, %v2885_v30  ;;  %v928_v44 = vmul.f32 %v919_v61, %v2877_v25  ;;  %v1102_v61 = vld.sshfl [vmem:[#allocation1] sm:$0xff pattern:$0x73625140] }
 0x5be   :  { %v970_v30 = vmax.f32 %v2909_v38, %v2911_v39  ;;  %2346 = vmatpush.msk.msra.mxu2 %vm1112_vm5, %v1102_v61 }
 0x5c0   :  { %v937_v45 = vpop.permute.xlu1 %936 }
 0x5c1   :  { %v2925_v46 = vadd.f32 %v937_v45, %v925_v9  ;;  %v2927_v47 = vadd.f32 %v937_v45, %v926_v18  ;;  %v2929_v48 = vadd.f32 %v937_v45, %v927_v43  ;;  %v2931_v51 = vadd.f32 %v937_v45, %v928_v44  ;;  %v1103_v9 = vld.sshfl [vmem:[#allocation1 + $0x8] sm:$0xff pattern:$0x73625140]  ;;  %v1104_v43 = vld.sshfl [vmem:[#allocation1 + $0x10] sm:$0xff pattern:$0x73625140] }
 0x5c2   :  { %2349 = vmatpush.msk.msrb.mxu3 %vm1112_vm5, %v1103_v9 }
 0x5c3   :  { %v979_v52 = vmax.f32 %v2929_v48, %v2931_v51  ;;  %v965_v20 = vadd.f32 %v2931_v51, %v2929_v48  ;;  %v950_v8 = vadd.f32 %v2927_v47, %v2925_v46  ;;  %v973_v25 = vmax.f32 %v2925_v46, %v2927_v47 }
 0x5c5   :  { %980 = vmax.xlane.f32.xlu0 %v979_v52  ;;  %966 = vadd.xlane.f32.xlu1 %v965_v20 }
 0x5c6   :  { %951 = vadd.xlane.f32.xlu2 %v950_v8 }
 0x5cd   :  { %974 = vmax.xlane.f32.xlu1 %v973_v25 }
 0x5ce   :  { %971 = vmax.xlane.f32.xlu2 %v970_v30 }
 0x5d5   :  { %977 = vmax.xlane.f32.xlu1 %v976_v53 }
 0x622   :  { %v964_v62 = vpop.xlane.xlu2 %963  ;;  %v949_v2 = vpop.xlane.xlu0 %948 }
 0x623   :  { %v968_v21 = vmul.f32 %v964_v62, %v959_v3  ;;  %v960_v22 = vmul.f32 %v959_v3, %v949_v2 }
 0x625   :  { %v983_v24 = vsel %vm982_vm2, %v960_v22, %v968_v21  ;;  %v2513_v22 = vmov 16.0  }
 0x638   :  { %v967_v1 = vpop.xlane.xlu1 %966  ;;  %v981_v16 = vpop.xlane.xlu0 %980 }
 0x639   :  { %v952_v49 = vpop.xlane.xlu2 %951  ;;  %v969_v4 = vmul.f32 %v967_v1, %v959_v3 }
 0x63a   :  { %v961_v5 = vmul.f32 %v959_v3, %v952_v49 }
 0x63c   :  { %v984_v10 = vsel %vm982_vm2, %v961_v5, %v969_v4 }
 0x640   :  { %v975_v6 = vpop.xlane.xlu1 %974 }
 0x641   :  { %v987_v17 = vsel %vm985_vm15, %v984_v10, %v975_v6  ;;  %v972_v23 = vpop.xlane.xlu2 %971 }
 0x642   :  { %v990_v19 = vsel %vm988_vm3, %v987_v17, %v981_v16  ;;  %v986_v26 = vsel %vm985_vm15, %v983_v24, %v972_v23 }
 0x643   :  { %1010 = vmatpush.msrb.mxu0 %v990_v19 }
 0x648   :  { %v978_v27 = vpop.xlane.xlu1 %977 }
 0x649   :  { %v989_v29 = vsel %vm988_vm3, %v986_v26, %v978_v27 }
 0x64a   :  { %1011 = vmatpush.msrb.mxu0 %v989_v29 }
 0x64b   :  { %2340 = vmatmul.msk.f32.vlgmr.msrb.gmra.mxu0 %vm992_vm4, %v991_v28  ;;  %vm1288_vm4 = vcmask 1040384  }
 0x64c   :  { %2352 = vmatpush.msk.msra.mxu0 %vm1112_vm5, %v1104_v43 }
 0x6c8   :  { %v1013_v31 = vpop.f32.mrf.mxu0 }
 0x6c9   :  { %v1016_v32 = vmax.f32 %v1013_v31, 0.0 }
 0x6cb   :  { %2341 = vmatpush.msk.msrb.mxu1 %vm97_vm0, %v1016_v32 }
 0x6cc   :  { %2342 = vmatmul.msk.f32.vlgmr.msrb.gmra.mxu1 %vm87_vm1, %v1017_v33 }
 0x6cd   :  { %2355 = vmatpush.msk.msra.mxu1 %vm1112_vm5, %v1105_v7 }
 0x6d4   :  { %2343 = vmatmul.msk.f32.gmra.mxu1 %vm87_vm1, %v1018_v34 }
 0x749   :  { %v1045_v35 = vpop.f32.mrf.mxu1 }
 0x74a   :  { %1053 = vrot.lane.b32.xlu0 %v1045_v35, %s2512_s10 }
 0x751   :  { %v1048_v36 = vpop.f32.mrf.mxu1 }
 0x752   :  { %1055 = vrot.lane.b32.xlu2 %v1048_v36, %s2512_s10 }
 0x7ac   :  { %v1056_v37 = vpop.permute.xlu2 %1055 }
 0x7ad   :  { %v1060_v42 = vadd.f32 %v1056_v37, %v1048_v36 }
 0x7af   :  { %v2345_v18 = vmul.f32 -1.442695, %v1060_v42 }
 0x7b1   :  { %2417 = vpow2.f32 %v2345_v18 }
 0x7b7   :  { %v2418_v52 = vpop.eup %2417 }
 0x7b8   :  { %v1068_v8 = vadd.f32 1.0, %v2418_v52 }
 0x7ba   :  { %v1095_v10 = vand.u32 2147483648, %v1068_v8  ;;  %vm1089_vm14 = vweird.f32 %v1068_v8  ;;  %v1093_v16 = vand.u32 2147483647, %v1068_v8 }
 0x7bc   :  { %v1054_v44 = vpop.permute.xlu0 %1053  ;;  %v1096_v19 = vor.u32 1.1754944e-38, %v1095_v10  ;;  %vm1094_vm3 = vcmp.eq.f32.partialorder %v1093_v16, 8.507059e+37 }
 0x7bd   :  { %v1059_v45 = vadd.f32 %v1054_v44, %v1045_v35 }
 0x7bf   :  { %v2344_v20 = vmul.f32 -1.442695, %v1059_v45 }
 0x7c1   :  { %2419 = vpow2.f32 %v2344_v20 }
 0x7c2   :  { %2421 = vrcp.f32 %v1068_v8 }
 0x7c7   :  { %v2420_v25 = vpop.eup %2419 }
 0x7c8   :  { %v1067_v30 = vadd.f32 1.0, %v2420_v25  ;;  %v2422_v53 = vpop.eup %2421 }
 0x7c9   :  { %v1085_v54 = vmul.f32 %v2422_v53, %v1068_v8  ;;  %vm1090_vm13 = vweird.f32 %v2422_v53 }
 0x7ca   :  { %2423 = vrcp.f32 %v1067_v30  ;;  %v1080_v63 = vand.u32 2147483648, %v1067_v30  ;;  %v1078_v1 = vand.u32 2147483647, %v1067_v30  ;;  %vm1074_vm7 = vweird.f32 %v1067_v30  ;;  %vm1091_vm2 = vmor %vm1089_vm14, %vm1090_vm13 }
 0x7cb   :  { %v1086_v62 = vsub.f32 1.0, %v1085_v54  ;;  %2425 = vrcp.f32 %v2513_v22  ;;  %vm1526_vm13 = vcmask 1045504   ;;  %vm1598_vm14 = vcmp.lt.s32.totalorder %v2708_v59, 2 }
 0x7cc   :  { %v1081_v3 = vor.u32 1.1754944e-38, %v1080_v63  ;;  %vm1079_vm12 = vcmp.eq.f32.partialorder %v1078_v1, 8.507059e+37 }
 0x7cd   :  { %v1087_v49 = vmul.f32 %v2422_v53, %v1086_v62 }
 0x7cf   :  { %v1088_v6 = vadd.f32 %v2422_v53, %v1087_v49 }
 0x7d0   :  { %v2424_v57 = vpop.eup %2423 }
 0x7d1   :  { %v1070_v58 = vmul.f32 %v2424_v57, %v1067_v30  ;;  %vm1075_vm1 = vweird.f32 %v2424_v57  ;;  %v1092_v17 = vsel %vm1091_vm2, %v2422_v53, %v1088_v6  ;;  %v2426_v26 = vpop.eup %2425 }
 0x7d2   :  { %vm1076_vm10 = vmor %vm1074_vm7, %vm1075_vm1  ;;  %v1097_v21 = vsel %vm1094_vm3, %v1096_v19, %v1092_v17  ;;  %v1250_v27 = vmul.f32 16.0, %v2426_v26  ;;  %vm1328_vm1 = vcmp.lt.s32.totalorder %v2708_v59, 32  ;;  %vm1410_vm7 = vcmp.lt.s32.totalorder %v2708_v59, 96 }
 0x7d3   :  { %v1071_v60 = vsub.f32 1.0, %v1070_v58 }
 0x7d4   :  { %v1251_v36 = vsub.f32 1.0, %v1250_v27 }
 0x7d5   :  { %v1072_v0 = vmul.f32 %v2424_v57, %v1071_v60 }
 0x7d6   :  { %v1252_v18 = vmul.f32 %v2426_v26, %v1251_v36 }
 0x7d7   :  { %v1073_v2 = vadd.f32 %v2424_v57, %v1072_v0 }
 0x7d8   :  { %v1253_v53 = vadd.f32 %v2426_v26, %v1252_v18 }
 0x7d9   :  { %v1077_v4 = vsel %vm1076_vm10, %v2424_v57, %v1073_v2  ;;  %vm1438_vm10 = vcmp.lt.s32.totalorder %v2708_v59, 80 }
 0x7da   :  { %v1082_v5 = vsel %vm1079_vm12, %v1081_v3, %v1077_v4  ;;  %vm1301_vm12 = vcmp.lt.s32.totalorder %v2708_v59, 48 }
 0x7db   :  { %2347 = vmatmul.msk.f32.vlgmr.msra.gmra.mxu2 %vm985_vm15, %v1082_v5  ;;  %2350 = vmatmul.msk.f32.vlgmr.msrb.gmra.mxu3 %vm985_vm15, %v1082_v5 }
 0x7dc   :  { %2353 = vmatmul.msk.f32.vlgmr.msra.gmra.mxu0 %vm985_vm15, %v1082_v5  ;;  %2356 = vmatmul.msk.f32.vlgmr.msra.gmra.mxu1 %vm985_vm15, %v1082_v5 }
 0x7e3   :  { %2348 = vmatmul.msk.f32.gmra.mxu2 %vm985_vm15, %v1097_v21  ;;  %2351 = vmatmul.msk.f32.gmra.mxu3 %vm985_vm15, %v1097_v21 }
 0x7e4   :  { %2354 = vmatmul.msk.f32.gmra.mxu0 %vm985_vm15, %v1097_v21  ;;  %2357 = vmatmul.msk.f32.gmra.mxu1 %vm985_vm15, %v1097_v21  ;;  %vm1254_vm15 = vweird.f32 %v2426_v26 }
 0x7e5   :  { %v1255_v3 = vsel %vm1254_vm15, %v2426_v26, %v1253_v53 }
 0x859   :  { %v1184_v23 = vpop.f32.mrf.mxu0  ;;  %v1207_v24 = vpop.f32.mrf.mxu1 }
 0x85a   :  { %v2974_v31 = vmul.f32 %v1184_v23, %v2913_v40  ;;  %v2977_v32 = vmul.f32 %v1207_v24, %v2915_v41 }
 0x85c   :  { %3895 = vst [vmem:[#allocation16_spill] sm:$0xff] %v2974_v31 }
 0x85d   :  { %3896 = vst [vmem:[#allocation17_spill] sm:$0xff] %v2977_v32 }
 0x85e   :  { %v1161_v35 = vpop.f32.mrf.mxu3  ;;  %v1138_v37 = vpop.f32.mrf.mxu2 }
 0x85f   :  { %v2997_v10 = vmul.f32 %v1161_v35, %v2911_v39  ;;  %v3003_v23 = vmul.f32 %v1138_v37, %v2909_v38 }
 0x861   :  { %v1187_v28 = vpop.f32.mrf.mxu0  ;;  %v1210_v29 = vpop.f32.mrf.mxu1 }
 0x862   :  { %v2980_v33 = vmul.f32 %v1187_v28, %v2929_v48  ;;  %v2983_v34 = vmul.f32 %v1210_v29, %v2931_v51 }
 0x864   :  { %3897 = vst [vmem:[#allocation18_spill] sm:$0xff] %v2980_v33  ;;  %v1235_v42 = vadd.f32 %v2980_v33, %v2974_v31  ;;  %v1274_v7 = vmax.f32 %v2974_v31, %v2980_v33  ;;  %v1242_v40 = vadd.f32 %v2983_v34, %v2977_v32  ;;  %v1281_v41 = vmax.f32 %v2977_v32, %v2983_v34 }
 0x865   :  { %3898 = vst [vmem:[#allocation19_spill] sm:$0xff] %v2983_v34 }
 0x866   :  { %v1236_v48 = vrot.slane %v1235_v42, 4  ;;  %v1275_v61 = vrot.slane %v1274_v7, 4  ;;  %v1243_v9 = vrot.slane %v1242_v40, 4  ;;  %v1282_v51 = vrot.slane %v1281_v41, 4  ;;  %v1164_v62 = vpop.f32.mrf.mxu3  ;;  %v1141_v49 = vpop.f32.mrf.mxu2 }
 0x867   :  { %v2994_v6 = vmul.f32 %v1164_v62, %v2927_v47  ;;  %v3000_v16 = vmul.f32 %v1141_v49, %v2925_v46 }
 0x868   :  { %v1237_v43 = vadd.f32 %v1236_v48, %v1235_v42  ;;  %v1276_v44 = vmax.f32 %v1274_v7, %v1275_v61  ;;  %v1244_v45 = vadd.f32 %v1243_v9, %v1242_v40  ;;  %v1283_v52 = vmax.f32 %v1281_v41, %v1282_v51 }
 0x869   :  { %v1228_v24 = vadd.f32 %v2994_v6, %v2997_v10  ;;  %v1221_v46 = vadd.f32 %v3000_v16, %v3003_v23  ;;  %v1267_v27 = vmax.f32 %v2997_v10, %v2994_v6  ;;  %v1260_v28 = vmax.f32 %v3003_v23, %v3000_v16 }
 0x86a   :  { %v1238_v20 = vrot.slane %v1237_v43, 2  ;;  %v1277_v8 = vrot.slane %v1276_v44, 2  ;;  %v1245_v25 = vrot.slane %v1244_v45, 2  ;;  %v1284_v30 = vrot.slane %v1283_v52, 2 }
 0x86b   :  { %v1229_v38 = vrot.slane %v1228_v24, 4  ;;  %v1222_v26 = vrot.slane %v1221_v46, 4  ;;  %v1268_v36 = vrot.slane %v1267_v27, 4  ;;  %v1261_v37 = vrot.slane %v1260_v28, 4 }
 0x86c   :  { %v1239_v54 = vadd.f32 %v1238_v20, %v1237_v43  ;;  %v1278_v57 = vmax.f32 %v1276_v44, %v1277_v8  ;;  %v1246_v58 = vadd.f32 %v1245_v25, %v1244_v45  ;;  %v1285_v60 = vmax.f32 %v1283_v52, %v1284_v30 }
 0x86d   :  { %v1230_v29 = vadd.f32 %v1229_v38, %v1228_v24  ;;  %v1223_v35 = vadd.f32 %v1222_v26, %v1221_v46  ;;  %v1269_v40 = vmax.f32 %v1267_v27, %v1268_v36  ;;  %v1262_v41 = vmax.f32 %v1260_v28, %v1261_v37  ;;  %v3117_v26 = vld [vmem:[%s3865_s16 + $0x6] ss:$8 sm:$0xf]  ;;  %v3133_v37 = vld [vmem:[%s3865_s16 + $0x4] ss:$8 sm:$0xf] }
 0x86e   :  { %v1240_v63 = vrot.slane %v1239_v54, 1  ;;  %v1279_v0 = vrot.slane %v1278_v57, 1  ;;  %v1247_v1 = vrot.slane %v1246_v58, 1  ;;  %v1286_v2 = vrot.slane %v1285_v60, 1 }
 0x86f   :  { %v1231_v42 = vrot.slane %v1230_v29, 2  ;;  %v1224_v7 = vrot.slane %v1223_v35, 2  ;;  %v1270_v9 = vrot.slane %v1269_v40, 2  ;;  %v1263_v51 = vrot.slane %v1262_v41, 2 }
 0x870   :  { %v1241_v4 = vadd.f32 %v1240_v63, %v1239_v54  ;;  %v1248_v5 = vadd.f32 %v1247_v1, %v1246_v58  ;;  %v1280_v19 = vmax.f32 %v1278_v57, %v1279_v0  ;;  %v1287_v22 = vmax.f32 %v1285_v60, %v1286_v2 }
 0x871   :  { %v1232_v48 = vadd.f32 %v1231_v42, %v1230_v29  ;;  %v1225_v61 = vadd.f32 %v1224_v7, %v1223_v35  ;;  %v1271_v44 = vmax.f32 %v1269_v40, %v1270_v9  ;;  %v1264_v45 = vmax.f32 %v1262_v41, %v1263_v51  ;;  %v3144_v41 = vld [vmem:[%s3865_s16] ss:$8 sm:$0xf] }
 0x872   :  { %v1258_v17 = vmul.f32 %v1255_v3, %v1241_v4  ;;  %v1259_v21 = vmul.f32 %v1255_v3, %v1248_v5  ;;  %v1448_v40 = vperm.slane %v3117_v26, 2  ;;  %v1392_v51 = vperm.slane %v3133_v37, 2 }
 0x873   :  { %v1233_v18 = vrot.slane %v1232_v48, 1  ;;  %v1226_v43 = vrot.slane %v1225_v61, 1  ;;  %v1272_v8 = vrot.slane %v1271_v44, 1  ;;  %v1265_v25 = vrot.slane %v1264_v45, 1 }
 0x874   :  { %v3008_v47 = vsel %vm1288_vm4, %v1258_v17, %v1280_v19  ;;  %v3011_v39 = vsel %vm1288_vm4, %v1259_v21, %v1287_v22  ;;  %v3092_v17 = vld [vmem:[%s3865_s16 + $0x2] ss:$8 sm:$0xf]  ;;  %v3098_v21 = vld [vmem:[%s3865_s16 + $0x1] ss:$8 sm:$0xf] }
 0x875   :  { %1324 = vrot.lane.b32.xlu2 %v3008_v47, %s2501_s2  ;;  %1408 = vrot.lane.b32.xlu1 %v3011_v39, %s2514_s11  ;;  %v1234_v52 = vadd.f32 %v1233_v18, %v1232_v48  ;;  %v1227_v20 = vadd.f32 %v1226_v43, %v1225_v61  ;;  %v1273_v54 = vmax.f32 %v1271_v44, %v1272_v8  ;;  %v1363_v19 = vperm.slane %v3092_v17, 0  ;;  %v3104_v22 = vld [vmem:[%s3865_s16 + $0x5] ss:$8 sm:$0xf]  ;;  %s2517_s16 = smov 125  }
 0x876   :  { %1326 = vrot.lane.b32.xlu0 %v3011_v39, %s2501_s2  ;;  %v1266_v57 = vmax.f32 %v1264_v45, %v1265_v25  ;;  %v1339_v28 = vperm.slane %v3098_v21, 3  ;;  %v1420_v36 = vperm.slane %v3104_v22, 2  ;;  %v1366_v42 = vperm.slane %v3092_v17, 3 }
 0x877   :  { %v1257_v30 = vmul.f32 %v1255_v3, %v1234_v52  ;;  %v1256_v53 = vmul.f32 %v1255_v3, %v1227_v20  ;;  %v1310_v43 = vperm.slane %v3144_v41, 2  ;;  %v1311_v44 = vperm.slane %v3144_v41, 3 }
 0x879   :  { %v3044_v58 = vsel %vm1288_vm4, %v1257_v30, %v1273_v54  ;;  %v3049_v60 = vsel %vm1288_vm4, %v1256_v53, %v1266_v57 }
 0x87d   :  { %1354 = vrot.lane.b32.xlu2 %v3011_v39, %s2509_s27  ;;  %1352 = vrot.lane.b32.xlu1 %v3008_v47, %s2509_s27 }
 0x87e   :  { %1406 = vrot.lane.b32.xlu0 %v3008_v47, %s2514_s11 }
 0x885   :  { %1434 = vrot.lane.b32.xlu2 %v3008_v47, %s2515_s5  ;;  %1299 = vrot.lane.b32.xlu1 %v3011_v39, %s2516_s25 }
 0x886   :  { %1436 = vrot.lane.b32.xlu0 %v3011_v39, %s2515_s5 }
 0x88d   :  { %1381 = vrot.lane.b32.xlu2 %v3011_v39, %s2503_s23  ;;  %1379 = vrot.lane.b32.xlu1 %v3008_v47, %s2503_s23 }
 0x88e   :  { %1297 = vrot.lane.b32.xlu0 %v3008_v47, %s2516_s25 }
 0x895   :  { %1404 = vrot.lane.b32.xlu2 %v3044_v58, %s2514_s11  ;;  %1320 = vrot.lane.b32.xlu1 %v3049_v60, %s2501_s2 }
 0x896   :  { %1322 = vrot.lane.b32.xlu0 %v3044_v58, %s2501_s2 }
 0x89d   :  { %1348 = vrot.lane.b32.xlu2 %v3049_v60, %s2509_s27  ;;  %1402 = vrot.lane.b32.xlu1 %v3049_v60, %s2514_s11 }
 0x89e   :  { %1350 = vrot.lane.b32.xlu0 %v3044_v58, %s2509_s27 }
 0x8a5   :  { %1295 = vrot.lane.b32.xlu2 %v3044_v58, %s2516_s25  ;;  %1432 = vrot.lane.b32.xlu1 %v3044_v58, %s2515_s5 }
 0x8a6   :  { %1430 = vrot.lane.b32.xlu0 %v3049_v60, %s2515_s5 }
 0x8ad   :  { %1375 = vrot.lane.b32.xlu2 %v3049_v60, %s2503_s23  ;;  %1293 = vrot.lane.b32.xlu1 %v3049_v60, %s2516_s25 }
 0x8ae   :  { %1377 = vrot.lane.b32.xlu0 %v3044_v58, %s2503_s23 }
 0x8cf   :  { %v3073_v62 = vpop.permute.xlu2 %1324 }
 0x8d7   :  { %v1355_v63 = vpop.permute.xlu2 %1354 }
 0x8df   :  { %v3075_v0 = vpop.permute.xlu2 %1434 }
 0x8e7   :  { %v3077_v1 = vpop.permute.xlu2 %1381  ;;  %v3079_v2 = vpop.permute.xlu1 %1408 }
 0x8e8   :  { %v3081_v49 = vpop.permute.xlu0 %1326 }
 0x8e9   :  { %v1329_v35 = vsel %vm1328_vm1, %v3073_v62, %v3081_v49 }
 0x8ea   :  { %v1347_v9 = vmul.f32 %v1339_v28, %v1329_v35 }
 0x8ec   :  { %v1465_v30 = vrot.slane %v1347_v9, 6 }
 0x8ef   :  { %v3083_v3 = vpop.permute.xlu2 %1404  ;;  %v3085_v4 = vpop.permute.xlu1 %1352 }
 0x8f0   :  { %v3087_v5 = vpop.permute.xlu0 %1406  ;;  %v1356_v48 = vsel %vm342_vm11, %v3085_v4, %v1355_v63 }
 0x8f1   :  { %v1411_v7 = vsel %vm1410_vm7, %v3087_v5, %v3079_v2  ;;  %v1374_v45 = vmul.f32 %v1366_v42, %v1356_v48 }
 0x8f2   :  { %v1428_v18 = vmul.f32 %v1420_v36, %v1411_v7 }
 0x8f3   :  { %v1477_v35 = vrot.slane %v1374_v45, 4 }
 0x8f7   :  { %v3106_v24 = vpop.permute.xlu2 %1348  ;;  %v3112_v38 = vpop.permute.xlu1 %1299 }
 0x8f8   :  { %v1359_v46 = vsel %vm342_vm11, %v1355_v63, %v3106_v24  ;;  %v3119_v27 = vpop.permute.xlu0 %1436  ;;  %v1500_v63 = vrot.slane %v1428_v18, 6  ;;  %v1337_v18 = vperm.slane %v3098_v21, 1 }
 0x8f9   :  { %v3122_v29 = vmul.f32 %v1363_v19, %v1359_v46  ;;  %v1439_v61 = vsel %vm1438_vm10, %v3075_v0, %v3119_v27 }
 0x8fa   :  { %v1456_v52 = vmul.f32 %v1448_v40, %v1439_v61  ;;  %v1489_v40 = vrot.slane %v3011_v39, 2  ;;  %v1338_v39 = vperm.slane %v3098_v21, 2 }
 0x8fc   :  { %v1512_v36 = vrot.slane %v1456_v52, 4 }
 0x8ff   :  { %v3157_v20 = vpop.permute.xlu2 %1295  ;;  %v3159_v8 = vpop.permute.xlu1 %1379 }
 0x900   :  { %v1298_v25 = vpop.permute.xlu0 %1297  ;;  %v1383_v53 = vsel %vm506_vm6, %v3159_v8, %v3077_v1 }
 0x901   :  { %v1302_v54 = vsel %vm1301_vm12, %v1298_v25, %v3112_v38  ;;  %v1303_v57 = vsel %vm1301_vm12, %v3157_v20, %v1298_v25  ;;  %v1400_v19 = vmul.f32 %v1392_v51, %v1383_v53  ;;  %v1336_v51 = vperm.slane %v3098_v21, 0 }
 0x902   :  { %v1318_v46 = vmul.f32 %v1310_v43, %v1303_v57  ;;  %v1319_v28 = vmul.f32 %v1311_v44, %v1302_v54 }
 0x903   :  { %v1533_v42 = vsel %vm1112_vm5, %v1400_v19, %v1500_v63 }
 0x904   :  { %v1521_v7 = vsel %vm1112_vm5, %v1319_v28, %v1465_v30  ;;  %v3175_v48 = vsel %vm97_vm0, %v1533_v42, %v1512_v36 }
 0x905   :  { %v1525_v61 = vsel %vm97_vm0, %v1521_v7, %v1477_v35  ;;  %1679 = vrot.lane.b32.xlu0 %v3175_v48, %s2506_s3  ;;  %1766 = vrot.lane.b32.xlu2 %v3175_v48, %s2517_s16  ;;  %v1419_v7 = vperm.slane %v3104_v22, 1  ;;  %v1880_v56 = vrot.slane %v3175_v48, 6 }
 0x906   :  { %v3183_v9 = vsel %vm1526_vm13, %v1525_v61, %v1489_v40  ;;  %v1412_v40 = vsel %vm1410_vm7, %v3083_v3, %v3087_v5 }
 0x907   :  { %1768 = vrot.lane.b32.xlu1 %v3183_v9, %s2517_s16  ;;  %v1321_v43 = vpop.permute.xlu1 %1320 }
 0x908   :  { %v1323_v44 = vpop.permute.xlu0 %1322  ;;  %v1332_v45 = vsel %vm1328_vm1, %v3081_v49, %v1321_v43  ;;  %v1364_v49 = vperm.slane %v3092_v17, 1 }
 0x909   :  { %v1330_v52 = vsel %vm1328_vm1, %v1323_v44, %v3073_v62  ;;  %v1331_v25 = vsel %vm1328_vm1, %v1321_v43, %v1323_v44  ;;  %v3198_v30 = vmul.f32 %v1336_v51, %v1332_v45  ;;  %v1365_v62 = vperm.slane %v3092_v17, 2 }
 0x90a   :  { %v3200_v53 = vmul.f32 %v1337_v18, %v1331_v25  ;;  %v1346_v21 = vmul.f32 %v1338_v39, %v1330_v52  ;;  %v1488_v17 = vrot.slane %v3008_v47, 2  ;;  %v1427_v18 = vmul.f32 %v1419_v7, %v1412_v40 }
 0x90b   :  { %v1447_v39 = vperm.slane %v3117_v26, 1  ;;  %v1446_v43 = vperm.slane %v3117_v26, 0  ;;  %v1486_v44 = vrot.slane %v3049_v60, 2  ;;  %v1421_v45 = vperm.slane %v3104_v22, 3 }
 0x90c   :  { %v1464_v54 = vrot.slane %v1346_v21, 6  ;;  %v1308_v60 = vperm.slane %v3144_v41, 0 }
 0x90d   :  { %1636 = vrot.lane.b32.xlu0 %v3175_v48, %s2507_s26  ;;  %1722 = vrot.lane.b32.xlu2 %v3175_v48, %s2512_s10 }
 0x90e   :  { %v1520_v57 = vsel %vm1112_vm5, %v1318_v46, %v1464_v54  ;;  %v1499_v54 = vrot.slane %v1427_v18, 6 }
 0x90f   :  { %1594 = vrot.lane.b32.xlu1 %v3183_v9, %s2518_s8  ;;  %v1403_v63 = vpop.permute.xlu1 %1402 }
 0x910   :  { %v1351_v19 = vpop.permute.xlu0 %1350  ;;  %v1413_v5 = vsel %vm1410_vm7, %v1403_v63, %v3083_v3  ;;  %v1414_v3 = vsel %vm1410_vm7, %v3079_v2, %v1403_v63  ;;  %v1474_v2 = vrot.slane %v3122_v29, 4  ;;  %v1376_v63 = vpop.permute.xlu2 %1375 }
 0x911   :  { %v1357_v46 = vsel %vm342_vm11, %v1351_v19, %v3085_v4  ;;  %v1358_v28 = vsel %vm342_vm11, %v3106_v24, %v1351_v19  ;;  %v1418_v24 = vperm.slane %v3104_v22, 0  ;;  %v1390_v22 = vperm.slane %v3133_v37, 0 }
 0x912   :  { %v1372_v35 = vmul.f32 %v1364_v49, %v1358_v28  ;;  %v1373_v36 = vmul.f32 %v1365_v62, %v1357_v46  ;;  %v1487_v49 = vrot.slane %v3044_v58, 2  ;;  %v1391_v62 = vperm.slane %v3133_v37, 1 }
 0x913   :  { %v1426_v52 = vmul.f32 %v1418_v24, %v1413_v5  ;;  %v1463_v46 = vrot.slane %v3200_v53, 6  ;;  %v1429_v28 = vmul.f32 %v1421_v45, %v1414_v3  ;;  %v1386_v3 = vsel %vm506_vm6, %v3077_v1, %v1376_v63 }
 0x914   :  { %v1476_v42 = vrot.slane %v1373_v36, 4  ;;  %vm1728_vm11 = vcmp.lt.s32.totalorder %v2708_v59, 126 }
 0x915   :  { %1592 = vrot.lane.b32.xlu2 %v3175_v48, %s2518_s8  ;;  %1724 = vrot.lane.b32.xlu0 %v3183_v9, %s2512_s10  ;;  %v1498_v36 = vrot.slane %v1426_v52, 6 }
 0x916   :  { %v1524_v61 = vsel %vm97_vm0, %v1520_v57, %v1476_v42  ;;  %v1449_v57 = vperm.slane %v3117_v26, 3  ;;  %v1462_v26 = vrot.slane %v3198_v30, 6 }
 0x917   :  { %v3229_v4 = vsel %vm1526_vm13, %v1524_v61, %v1488_v17  ;;  %v1433_v51 = vpop.permute.xlu1 %1432 }
 0x918   :  { %v1431_v47 = vpop.permute.xlu0 %1430  ;;  %v1440_v25 = vsel %vm1438_vm10, %v1433_v51, %v3075_v0  ;;  %v1309_v0 = vperm.slane %v3144_v41, 1  ;;  %v1874_v32 = vrot.slane %v3229_v4, 6 }
 0x919   :  { %v1441_v21 = vsel %vm1438_vm10, %v1431_v47, %v1433_v51  ;;  %v1455_v58 = vmul.f32 %v1447_v39, %v1440_v25  ;;  %v1442_v42 = vsel %vm1438_vm10, %v3119_v27, %v1431_v47  ;;  %v1475_v51 = vrot.slane %v1372_v35, 4 }
 0x91a   :  { %v1454_v19 = vmul.f32 %v1446_v43, %v1441_v21  ;;  %v1457_v18 = vmul.f32 %v1449_v57, %v1442_v42  ;;  %v1393_v25 = vperm.slane %v3133_v37, 3  ;;  %v1501_v37 = vrot.slane %v1429_v28, 6 }
 0x91b   :  { %v1511_v47 = vrot.slane %v1455_v58, 4 }
 0x91c   :  { %v1510_v5 = vrot.slane %v1454_v19, 4  ;;  %v1513_v57 = vrot.slane %v1457_v18, 4 }
 0x91d   :  { %1681 = vrot.lane.b32.xlu2 %v3183_v9, %s2506_s3  ;;  %1638 = vrot.lane.b32.xlu0 %v3183_v9, %s2507_s26 }
 0x91f   :  { %v1294_v41 = vpop.permute.xlu1 %1293 }
 0x920   :  { %v1378_v7 = vpop.permute.xlu0 %1377  ;;  %v1304_v17 = vsel %vm1301_vm12, %v1294_v41, %v3157_v20  ;;  %v1305_v29 = vsel %vm1301_vm12, %v3112_v38, %v1294_v41 }
 0x921   :  { %v1384_v30 = vsel %vm506_vm6, %v1378_v7, %v3159_v8  ;;  %v1385_v53 = vsel %vm506_vm6, %v1376_v63, %v1378_v7  ;;  %v1316_v40 = vmul.f32 %v1308_v60, %v1305_v29  ;;  %v1317_v61 = vmul.f32 %v1309_v0, %v1304_v17  ;;  %v3409_v7 = vld [vmem:[%s3866_s17 + $0x6] ss:$8 sm:$0xf] }
 0x922   :  { %v1398_v27 = vmul.f32 %v1390_v22, %v1385_v53  ;;  %v1399_v24 = vmul.f32 %v1391_v62, %v1384_v30  ;;  %v1401_v60 = vmul.f32 %v1393_v25, %v1386_v3  ;;  %vm1772_vm6 = vcmp.lt.s32.totalorder %v2708_v59, 125 }
 0x923   :  { %v1518_v20 = vsel %vm1112_vm5, %v1316_v40, %v1462_v26  ;;  %v1519_v39 = vsel %vm1112_vm5, %v1317_v61, %v1463_v46  ;;  %v3874_v17 = vperm.slane %v3409_v7, 0  ;;  %v3873_v29 = vperm.slane %v3409_v7, 1 }
 0x924   :  { %v1531_v38 = vsel %vm1112_vm5, %v1398_v27, %v1498_v36  ;;  %v1532_v43 = vsel %vm1112_vm5, %v1399_v24, %v1499_v54  ;;  %v1522_v8 = vsel %vm97_vm0, %v1518_v20, %v1474_v2  ;;  %v1523_v45 = vsel %vm97_vm0, %v1519_v39, %v1475_v51 }
 0x925   :  { %v3281_v52 = vsel %vm97_vm0, %v1531_v38, %v1510_v5  ;;  %v3284_v35 = vsel %vm97_vm0, %v1532_v43, %v1511_v47  ;;  %v3292_v21 = vsel %vm1526_vm13, %v1522_v8, %v1486_v44  ;;  %v3295_v54 = vsel %vm1526_vm13, %v1523_v45, %v1487_v49  ;;  %v3445_v38 = vld [vmem:[%s3866_s17 + $0x5] ss:$8 sm:$0xf] }
 0x926   :  { %1675 = vrot.lane.b32.xlu2 %v3284_v35, %s2506_s3  ;;  %1758 = vrot.lane.b32.xlu0 %v3281_v52, %s2517_s16  ;;  %v1534_v0 = vsel %vm1112_vm5, %v1401_v60, %v1501_v37  ;;  %v1786_v43 = vperm.slane %v3409_v7, 2  ;;  %v1787_v8 = vperm.slane %v3409_v7, 3  ;;  %v1742_v45 = vperm.slane %v3445_v38, 2 }
 0x927   :  { %1762 = vrot.lane.b32.xlu1 %v3284_v35, %s2517_s16  ;;  %v3304_v22 = vsel %vm97_vm0, %v1534_v0, %v1513_v57  ;;  %v1743_v34 = vperm.slane %v3445_v38, 3 }
 0x92e   :  { %1726 = vrot.lane.b32.xlu2 %v3304_v22, %s2512_s10  ;;  %1714 = vrot.lane.b32.xlu0 %v3281_v52, %s2512_s10 }
 0x92f   :  { %1718 = vrot.lane.b32.xlu1 %v3284_v35, %s2512_s10 }
 0x936   :  { %1640 = vrot.lane.b32.xlu2 %v3304_v22, %s2507_s26  ;;  %1770 = vrot.lane.b32.xlu0 %v3304_v22, %s2517_s16 }
 0x937   :  { %1671 = vrot.lane.b32.xlu1 %v3281_v52, %s2506_s3 }
 0x93e   :  { %1588 = vrot.lane.b32.xlu2 %v3284_v35, %s2518_s8  ;;  %1628 = vrot.lane.b32.xlu0 %v3281_v52, %s2507_s26 }
 0x93f   :  { %1632 = vrot.lane.b32.xlu1 %v3284_v35, %s2507_s26 }
 0x946   :  { %1545 = vrot.lane.b32.xlu2 %v3284_v35, %s2519_s9  ;;  %1596 = vrot.lane.b32.xlu0 %v3304_v22, %s2518_s8 }
 0x947   :  { %1584 = vrot.lane.b32.xlu1 %v3281_v52, %s2518_s8 }
 0x94e   :  { %1764 = vrot.lane.b32.xlu2 %v3229_v4, %s2517_s16  ;;  %1553 = vrot.lane.b32.xlu0 %v3304_v22, %s2519_s9 }
 0x94f   :  { %1683 = vrot.lane.b32.xlu1 %v3304_v22, %s2506_s3 }
 0x956   :  { %1720 = vrot.lane.b32.xlu2 %v3229_v4, %s2512_s10  ;;  %1756 = vrot.lane.b32.xlu0 %v3292_v21, %s2517_s16 }
 0x957   :  { %1541 = vrot.lane.b32.xlu1 %v3281_v52, %s2519_s9 }
 0x95e   :  { %1677 = vrot.lane.b32.xlu2 %v3229_v4, %s2506_s3  ;;  %1712 = vrot.lane.b32.xlu0 %v3292_v21, %s2512_s10 }
 0x95f   :  { %1760 = vrot.lane.b32.xlu1 %v3295_v54, %s2517_s16  ;;  %v1767_v1 = vpop.permute.xlu2 %1766  ;;  %s2298_s16 = sshll.u32 %s3868_s19, 4  ;;  %s2299_s16 = int_to_ptr.hbm [resolvable:$true] %s2298_s16 }
 0x966   :  { %1630 = vrot.lane.b32.xlu2 %v3295_v54, %s2507_s26  ;;  %1669 = vrot.lane.b32.xlu0 %v3292_v21, %s2506_s3 }
 0x967   :  { %1716 = vrot.lane.b32.xlu1 %v3295_v54, %s2512_s10  ;;  %v3354_v44 = vpop.permute.xlu2 %1722 }
 0x96e   :  { %1582 = vrot.lane.b32.xlu2 %v3292_v21, %s2518_s8  ;;  %1586 = vrot.lane.b32.xlu0 %v3295_v54, %s2518_s8 }
 0x96f   :  { %1673 = vrot.lane.b32.xlu1 %v3295_v54, %s2506_s3  ;;  %v3362_v49 = vpop.permute.xlu2 %1592 }
 0x976   :  { %1551 = vrot.lane.b32.xlu2 %v3183_v9, %s2519_s9  ;;  %1539 = vrot.lane.b32.xlu0 %v3292_v21, %s2519_s9 }
 0x977   :  { %1626 = vrot.lane.b32.xlu1 %v3292_v21, %s2507_s26  ;;  %v3370_v62 = vpop.permute.xlu0 %1679  ;;  %v3372_v2 = vpop.permute.xlu2 %1681 }
 0x979   :  { %v3384_v58 = vpop.permute.xlu1 %1768 }
 0x97e   :  { %1547 = vrot.lane.b32.xlu2 %v3229_v4, %s2519_s9  ;;  %1590 = vrot.lane.b32.xlu0 %v3229_v4, %s2518_s8  ;;  %s2521_s8 = smov 256  }
 0x97f   :  { %1634 = vrot.lane.b32.xlu1 %v3229_v4, %s2507_s26  ;;  %v3380_v63 = vpop.permute.xlu0 %1636 }
 0x980   :  { %v3382_v26 = vpop.permute.xlu2 %1675 }
 0x981   :  { %v3398_v42 = vpop.permute.xlu1 %1594 }
 0x987   :  { %1543 = vrot.lane.b32.xlu1 %v3295_v54, %s2519_s9  ;;  %v3390_v46 = vpop.permute.xlu0 %1724 }
 0x988   :  { %v3388_v19 = vpop.permute.xlu2 %1726 }
 0x989   :  { %v1730_v25 = vsel %vm1728_vm11, %v3354_v44, %v3388_v19 }
 0x98f   :  { %1549 = vrot.lane.b32.xlu1 %v3175_v48, %s2519_s9  ;;  %v3396_v36 = vpop.permute.xlu0 %1638 }
 0x990   :  { %v3394_v28 = vpop.permute.xlu2 %1640 }
 0x991   :  { %v3404_v41 = vsel %vm406_vm9, %v3380_v63, %v3394_v28 }
 0x998   :  { %v3414_v30 = vpop.permute.xlu2 %1588  ;;  %v1759_v53 = vpop.permute.xlu0 %1758 }
 0x999   :  { %v1763_v40 = vpop.permute.xlu1 %1762 }
 0x99a   :  { %v1776_v61 = vsel %vm1772_vm6, %v1763_v40, %v1767_v1  ;;  %v1778_v27 = vsel %vm1772_vm6, %v1759_v53, %v1763_v40 }
 0x99b   :  { %v3422_v24 = vmul.f32 %v3874_v17, %v1778_v27  ;;  %v3426_v51 = vmul.f32 %v3873_v29, %v1776_v61 }
 0x99d   :  { %v3872_v47 = vrot.slane %v3422_v24, 4  ;;  %v3871_v18 = vrot.slane %v3426_v51, 4 }
 0x99f   :  { %2368 = vmatpush.msk.msrb.mxu2 %vm1112_vm5, %v3872_v47  ;;  %2370 = vmatpush.msk.msra.mxu3 %vm1112_vm5, %v3871_v18  ;;  %v1754_v47 = vmul.f32 %v1742_v45, %v1730_v25 }
 0x9a0   :  { %v3436_v5 = vpop.permute.xlu2 %1545  ;;  %v3438_v20 = vpop.permute.xlu0 %1714 }
 0x9a1   :  { %v3440_v39 = vpop.permute.xlu1 %1718  ;;  %v1908_v11 = vrot.slane %v1754_v47, 2 }
 0x9a8   :  { %v3455_v3 = vpop.permute.xlu2 %1764  ;;  %v1771_v37 = vpop.permute.xlu0 %1770 }
 0x9a9   :  { %v1773_v57 = vsel %vm1772_vm6, %v3455_v3, %v3384_v58  ;;  %v1774_v60 = vsel %vm1772_vm6, %v1767_v1, %v1771_v37  ;;  %v1780_v0 = vsel %vm1772_vm6, %v1771_v37, %v1759_v53  ;;  %v3465_v40 = vpop.permute.xlu1 %1671 }
 0x9aa   :  { %v1794_v61 = vmul.f32 %v1786_v43, %v1773_v57  ;;  %v1798_v27 = vmul.f32 %v1786_v43, %v1774_v60  ;;  %v1799_v18 = vmul.f32 %v1787_v8, %v1780_v0 }
 0x9ac   :  { %v1934_v29 = vrot.slane %v1794_v61, 4  ;;  %v1940_v17 = vrot.slane %v1798_v27, 4  ;;  %v1942_v55 = vrot.slane %v1799_v18, 4 }
 0x9ae   :  { %2372 = vmatpush.msk.msrb.mxu0 %vm1112_vm5, %v1940_v17  ;;  %2374 = vmatpush.msk.msrb.mxu1 %vm1112_vm5, %v1942_v55  ;;  %v1941_v12 = vsel %vm97_vm0, %v1934_v29, %v1940_v17  ;;  %v1970_v18 = vsel %vm97_vm0, %v1908_v11, %v1934_v29  ;;  %v3495_v29 = vld [vmem:[%s3866_s17 + $0x4] ss:$8 sm:$0xf] }
 0x9af   :  { %v1698_v61 = vperm.slane %v3495_v29, 2 }
 0x9b0   :  { %v3470_v1 = vpop.permute.xlu2 %1720  ;;  %v3472_v14 = vpop.permute.xlu0 %1628  ;;  %2029 = vmatpush.msrb.mxu0 %v1941_v12  ;;  %v3489_v12 = vld [vmem:[%s3866_s17 + $0x2] ss:$8 sm:$0xf] }
 0x9b1   :  { %v1729_v53 = vsel %vm1728_vm11, %v3470_v1, %v3390_v46  ;;  %v3478_v43 = vpop.permute.xlu1 %1632  ;;  %v3878_v60 = vperm.slane %v3489_v12, 2 }
 0x9b2   :  { %v1750_v25 = vmul.f32 %v1742_v45, %v1729_v53  ;;  %2030 = vmatpush.msrb.mxu0 %v1970_v18 }
 0x9b4   :  { %v1902_v37 = vrot.slane %v1750_v25, 2 }
 0x9b6   :  { %v1909_v17 = vsel %vm1526_vm13, %v1902_v37, %v1908_v11  ;;  %v1645_v11 = vsel %vm406_vm9, %v3478_v43, %v3380_v63 }
 0x9b7   :  { %2031 = vmatpush.msrb.mxu0 %v1909_v17  ;;  %v3511_v18 = vmul.f32 %v3878_v60, %v1645_v11  ;;  %v1736_v11 = vsel %vm1728_vm11, %v3388_v19, %v3438_v20 }
 0x9b8   :  { %v3482_v47 = vpop.permute.xlu0 %1596  ;;  %v3501_v45 = vpop.permute.xlu2 %1677 }
 0x9b9   :  { %v3484_v57 = vpop.permute.xlu1 %1584  ;;  %v1685_v63 = vsel %vm442_vm8, %v3501_v45, %v3372_v2  ;;  %v3880_v60 = vrot.slane %v3511_v18, 4 }
 0x9ba   :  { %v1706_v31 = vmul.f32 %v1698_v61, %v1685_v63 }
 0x9bb   :  { %v1962_v19 = vsel %vm1112_vm5, %v3880_v60, %v1874_v32  ;;  %v1882_v60 = vrot.slane %v3304_v22, 6 }
 0x9c0   :  { %v3503_v0 = vpop.permute.xlu0 %1553 }
 0x9c1   :  { %v1684_v27 = vpop.permute.xlu1 %1683 }
 0x9c2   :  { %v1686_v53 = vsel %vm442_vm8, %v3370_v62, %v1684_v27 }
 0x9c3   :  { %v1710_v25 = vmul.f32 %v1698_v61, %v1686_v53  ;;  %v1881_v61 = vsel %vm1112_vm5, %v1874_v32, %v1880_v56  ;;  %v1755_v53 = vmul.f32 %v1743_v34, %v1736_v11  ;;  %v1734_v56 = vsel %vm1728_vm11, %v3438_v20, %v3440_v39 }
 0x9c4   :  { %v1732_v32 = vsel %vm1728_vm11, %v3440_v39, %v3354_v44  ;;  %v1692_v44 = vsel %vm442_vm8, %v1684_v27, %v3465_v40  ;;  %v3899_v39 = vperm.slane %v3409_v7, 0  ;;  %v3901_v27 = vrot.slane %v3422_v24, 4 }
 0x9c5   :  { %v1966_v17 = vsel %vm1526_vm13, %v1710_v25, %v1902_v37  ;;  %v1910_v48 = vrot.slane %v1755_v53, 2 }
 0x9c6   :  { %2032 = vmatpush.msrb.mxu0 %v1966_v17  ;;  %v1740_v17 = vperm.slane %v3445_v38, 0 }
 0x9c8   :  { %2033 = vmatpush.msrb.mxu0 %v1706_v31  ;;  %v1757_v33 = vpop.permute.xlu0 %1756 }
 0x9c9   :  { %v1779_v37 = vsel %vm1772_vm6, %v3384_v58, %v1757_v33  ;;  %v3529_v4 = vpop.permute.xlu1 %1541  ;;  %v1741_v58 = vperm.slane %v3445_v38, 1  ;;  %v1699_v38 = vperm.slane %v3495_v29, 3 }
 0x9ca   :  { %v1795_v63 = vmul.f32 %v1787_v8, %v1779_v37  ;;  %2034 = vmatpush.msrb.mxu0 %v1881_v61 }
 0x9cc   :  { %v1935_v25 = vrot.slane %v1795_v63, 4  ;;  %2035 = vmatpush.msrb.mxu0 %v1962_v19  ;;  %v1752_v63 = vmul.f32 %v1740_v17, %v1734_v56  ;;  %v3900_v19 = vperm.slane %v3409_v7, 1 }
 0x9ce   :  { %v1943_v31 = vsel %vm97_vm0, %v1935_v25, %v1942_v55  ;;  %v1971_v11 = vsel %vm97_vm0, %v1910_v48, %v1935_v25 }
 0x9cf   :  { %2049 = vmatpush.msrb.mxu1 %v1943_v31  ;;  %v1753_v31 = vmul.f32 %v1741_v58, %v1732_v32  ;;  %v1875_v32 = vrot.slane %v3183_v9, 6 }
 0x9d0   :  { %v1713_v8 = vpop.permute.xlu0 %1712 }
 0x9d1   :  { %v1735_v55 = vsel %vm1728_vm11, %v3390_v46, %v1713_v8  ;;  %v1761_v37 = vpop.permute.xlu1 %1760  ;;  %2050 = vmatpush.msrb.mxu1 %v1971_v11  ;;  %v1906_v22 = vrot.slane %v1753_v31, 2 }
 0x9d2   :  { %v1751_v61 = vmul.f32 %v1743_v34, %v1735_v55  ;;  %v1775_v20 = vsel %vm1772_vm6, %v1761_v37, %v3455_v3  ;;  %v1777_v53 = vsel %vm1772_vm6, %v1757_v33, %v1761_v37  ;;  %v1656_v34 = vperm.slane %v3489_v12, 3 }
 0x9d3   :  { %v1792_v46 = vmul.f32 %v3899_v39, %v1777_v53  ;;  %v1793_v25 = vmul.f32 %v3900_v19, %v1775_v20  ;;  %v1711_v33 = vmul.f32 %v1699_v38, %v1692_v44  ;;  %v1904_v37 = vrot.slane %v1752_v63, 2 }
 0x9d4   :  { %v1903_v11 = vrot.slane %v1751_v61, 2  ;;  %v3902_v53 = vrot.slane %v3426_v51, 4  ;;  %v3576_v61 = vmul.f32 %v1656_v34, %v3404_v41  ;;  %v1697_v20 = vperm.slane %v3495_v29, 1  ;;  %v3585_v41 = vpop.permute.xlu2 %1630 }
 0x9d5   :  { %v1932_v55 = vrot.slane %v1792_v46, 4  ;;  %v1933_v3 = vrot.slane %v1793_v25, 4  ;;  %v1883_v44 = vsel %vm1112_vm5, %v1875_v32, %v1882_v60  ;;  %v1696_v60 = vperm.slane %v3495_v29, 0 }
 0x9d6   :  { %v1911_v56 = vsel %vm1526_vm13, %v1903_v11, %v1910_v48  ;;  %v1967_v24 = vsel %vm1526_vm13, %v1711_v33, %v1903_v11  ;;  %v1654_v11 = vperm.slane %v3489_v12, 1  ;;  %v1647_v29 = vsel %vm406_vm9, %v3472_v14, %v3478_v43 }
 0x9d7   :  { %v1937_v15 = vsel %vm97_vm0, %v1932_v55, %v3901_v27  ;;  %v1939_v7 = vsel %vm97_vm0, %v1933_v3, %v3902_v53  ;;  %2051 = vmatpush.msrb.mxu1 %v1911_v56  ;;  %v1968_v9 = vsel %vm97_vm0, %v1904_v37, %v1932_v55  ;;  %v1969_v19 = vsel %vm97_vm0, %v1906_v22, %v1933_v3 }
 0x9d8   :  { %1989 = vmatpush.msrb.mxu2 %v1937_v15  ;;  %2009 = vmatpush.msra.mxu3 %v1939_v7  ;;  %v1670_v48 = vpop.permute.xlu0 %1669  ;;  %v1876_v53 = vrot.slane %v3281_v52, 6  ;;  %v1878_v7 = vrot.slane %v3284_v35, 6 }
 0x9d9   :  { %v1691_v51 = vsel %vm442_vm8, %v3372_v2, %v1670_v48  ;;  %v1717_v63 = vpop.permute.xlu1 %1716  ;;  %2052 = vmatpush.msrb.mxu1 %v1967_v24  ;;  %v1688_v2 = vsel %vm442_vm8, %v3382_v26, %v3370_v62  ;;  %v1649_v62 = vsel %vm406_vm9, %v3394_v28, %v3472_v14  ;;  %v3621_v28 = vmul.f32 %v1654_v11, %v1647_v29 }
 0x9da   :  { %v1707_v39 = vmul.f32 %v1699_v38, %v1691_v51  ;;  %v1731_v15 = vsel %vm1728_vm11, %v1717_v63, %v3470_v1  ;;  %v1733_v46 = vsel %vm1728_vm11, %v1713_v8, %v1717_v63  ;;  %1990 = vmatpush.msrb.mxu2 %v1968_v9  ;;  %2010 = vmatpush.msra.mxu3 %v1969_v19  ;;  %v1850_v38 = vrot.slane %v3576_v61, 4 }
 0x9db   :  { %v1748_v25 = vmul.f32 %v1740_v17, %v1733_v46  ;;  %v1749_v31 = vmul.f32 %v1741_v58, %v1731_v15  ;;  %v1690_v1 = vsel %vm442_vm8, %v3465_v40, %v3382_v26  ;;  %v1653_v8 = vperm.slane %v3489_v12, 0 }
 0x9dc   :  { %2053 = vmatpush.msrb.mxu1 %v1707_v39  ;;  %v1709_v55 = vmul.f32 %v1697_v20, %v1688_v2  ;;  %v1708_v26 = vmul.f32 %v1696_v60, %v1690_v1  ;;  %v1963_v43 = vsel %vm1112_vm5, %v1850_v38, %v1875_v32  ;;  %v1872_v32 = vrot.slane %v3292_v21, 6  ;;  %v1583_v35 = vpop.permute.xlu2 %1582 }
 0x9dd   :  { %v1900_v17 = vrot.slane %v1748_v25, 2  ;;  %v1901_v58 = vrot.slane %v1749_v31, 2  ;;  %v3617_v33 = vmul.f32 %v1653_v8, %v1649_v62  ;;  %v1873_v51 = vrot.slane %v3295_v54, 6 }
 0x9de   :  { %2054 = vmatpush.msrb.mxu1 %v1883_v44  ;;  %v1846_v52 = vrot.slane %v3621_v28, 4  ;;  %v1877_v21 = vsel %vm1112_vm5, %v1872_v32, %v1876_v53  ;;  %v1606_v15 = vsel %vm1598_vm14, %v3482_v47, %v3484_v57  ;;  %v1604_v25 = vsel %vm1598_vm14, %v3484_v57, %v3414_v30 }
 0x9df   :  { %v1905_v40 = vsel %vm1526_vm13, %v1900_v17, %v1904_v37  ;;  %v1907_v3 = vsel %vm1526_vm13, %v1901_v58, %v1906_v22  ;;  %v1964_v37 = vsel %vm1526_vm13, %v1708_v26, %v1900_v17  ;;  %v1965_v27 = vsel %vm1526_vm13, %v1709_v55, %v1901_v58  ;;  %v3677_v17 = vld [vmem:[%s3866_s17] ss:$8 sm:$0xf] }
 0x9e0   :  { %1991 = vmatpush.msrb.mxu2 %v1905_v40  ;;  %2011 = vmatpush.msra.mxu3 %v1907_v3  ;;  %v3623_v14 = vpop.permute.xlu0 %1586  ;;  %v1844_v44 = vrot.slane %v3617_v33, 4  ;;  %v1879_v54 = vsel %vm1112_vm5, %v1873_v51, %v1878_v7  ;;  %v1961_v2 = vsel %vm1112_vm5, %v1846_v52, %v1873_v51  ;;  %v1602_v62 = vsel %vm1598_vm14, %v3414_v30, %v3362_v49 }
 0x9e1   :  { %v1674_v56 = vpop.permute.xlu1 %1673  ;;  %2055 = vmatpush.msrb.mxu1 %v1963_v43  ;;  %v1603_v31 = vsel %vm1598_vm14, %v1583_v35, %v3623_v14  ;;  %v1566_v33 = vperm.slane %v3677_v17, 0  ;;  %v1567_v7 = vperm.slane %v3677_v17, 1 }
 0x9e2   :  { %v1687_v22 = vsel %vm442_vm8, %v1674_v56, %v3501_v45  ;;  %v1689_v24 = vsel %vm442_vm8, %v1670_v48, %v1674_v56  ;;  %1992 = vmatpush.msrb.mxu2 %v1964_v37  ;;  %2012 = vmatpush.msra.mxu3 %v1965_v27  ;;  %v3645_v45 = vld [vmem:[%s3866_s17 + $0x1] ss:$8 sm:$0xf]  ;;  %v1960_v19 = vsel %vm1112_vm5, %v1844_v44, %v1872_v32  ;;  %vm1555_vm8 = vcmp.lt.s32.totalorder %v2708_v59, 3 }
 0x9e3   :  { %v1704_v63 = vmul.f32 %v1696_v60, %v1689_v24  ;;  %v1705_v9 = vmul.f32 %v1697_v20, %v1687_v22  ;;  %v1610_v48 = vperm.slane %v3645_v45, 0  ;;  %v1605_v20 = vsel %vm1598_vm14, %v3398_v42, %v1583_v35 }
 0x9e4   :  { %v1611_v39 = vperm.slane %v3645_v45, 1  ;;  %v1612_v60 = vperm.slane %v3645_v45, 2  ;;  %v1613_v37 = vperm.slane %v3645_v45, 3  ;;  %v1563_v53 = vsel %vm1555_vm8, %v3503_v0, %v3529_v4  ;;  %v1552_v45 = vpop.permute.xlu2 %1551 }
 0x9e5   :  { %1993 = vmatpush.msrb.mxu2 %v1704_v63  ;;  %2013 = vmatpush.msra.mxu3 %v1705_v9  ;;  %v1618_v29 = vmul.f32 %v1610_v48, %v1605_v20  ;;  %v1622_v55 = vmul.f32 %v1610_v48, %v1606_v15  ;;  %v1600_v24 = vsel %vm1598_vm14, %v3362_v49, %v3482_v47  ;;  %v3903_v20 = vperm.slane %v3489_v12, 2  ;;  %v1972_v12 = vld [vmem:[%s3861_s12] sm:$0x1] }
 0x9e6   :  { %v1623_v40 = vmul.f32 %v1611_v39, %v1604_v25  ;;  %v1619_v3 = vmul.f32 %v1611_v39, %v1603_v31  ;;  %v3691_v56 = vmul.f32 %v1612_v60, %v1602_v62  ;;  %v1561_v51 = vsel %vm1555_vm8, %v3529_v4, %v3436_v5 }
 0x9e7   :  { %1994 = vmatpush.msrb.mxu2 %v1877_v21  ;;  %2014 = vmatpush.msra.mxu3 %v1879_v54  ;;  %v1808_v27 = vrot.slane %v1618_v29, 2  ;;  %v1578_v35 = vmul.f32 %v1566_v33, %v1563_v53  ;;  %v1625_v15 = vmul.f32 %v1613_v37, %v1600_v24 }
 0x9e8   :  { %v3658_v46 = vpop.permute.xlu0 %1539  ;;  %v1814_v32 = vrot.slane %v1623_v40, 2  ;;  %v1809_v63 = vrot.slane %v1619_v3, 2 }
 0x9e9   :  { %1995 = vmatpush.msrb.mxu2 %v1960_v19  ;;  %2015 = vmatpush.msra.mxu3 %v1961_v2  ;;  %v1627_v1 = vpop.permute.xlu1 %1626  ;;  %v1579_v19 = vmul.f32 %v1567_v7, %v1561_v51 }
 0x9ea   :  { %v1646_v57 = vsel %vm406_vm9, %v1627_v1, %v3585_v41  ;;  %v1648_v58 = vsel %vm406_vm9, %v3396_v36, %v1627_v1  ;;  %v1815_v2 = vsel %vm1526_vm13, %v1809_v63, %v1814_v32  ;;  %v1952_v1 = vsel %vm1526_vm13, %v1578_v35, %v1808_v27 }
 0x9eb   :  { %v1661_v30 = vmul.f32 %v1653_v8, %v1648_v58  ;;  %v1662_v26 = vmul.f32 %v1654_v11, %v1646_v57  ;;  %v1812_v8 = vrot.slane %v1622_v55, 2  ;;  %v3904_v57 = vrot.slane %v3511_v18, 4 }
 0x9ed   :  { %v1840_v28 = vrot.slane %v1661_v30, 4  ;;  %v1841_v43 = vrot.slane %v1662_v26, 4  ;;  %v1818_v30 = vrot.slane %v1625_v15, 2 }
 0x9ef   :  { %v1845_v11 = vsel %vm97_vm0, %v1840_v28, %v1844_v44  ;;  %v1847_v22 = vsel %vm97_vm0, %v1841_v43, %v1846_v52  ;;  %v1956_v47 = vsel %vm97_vm0, %v1812_v8, %v1840_v28  ;;  %v1957_v54 = vsel %vm97_vm0, %v1814_v32, %v1841_v43  ;;  %v1548_v43 = vpop.permute.xlu2 %1547 }
 0x9f0   :  { %1996 = vmatpush.msrb.mxu2 %v1845_v11  ;;  %2016 = vmatpush.msra.mxu3 %v1847_v22  ;;  %v1591_v9 = vpop.permute.xlu0 %1590 }
 0x9f1   :  { %v1599_v44 = vsel %vm1598_vm14, %v1591_v9, %v3398_v42  ;;  %v1601_v52 = vsel %vm1598_vm14, %v3623_v14, %v1591_v9  ;;  %v1635_v49 = vpop.permute.xlu1 %1634  ;;  %v1813_v42 = vsel %vm1526_vm13, %v1808_v27, %v1812_v8  ;;  %v1562_v14 = vsel %vm1555_vm8, %v1552_v45, %v3658_v46 }
 0x9f2   :  { %v1642_v4 = vsel %vm406_vm9, %v1635_v49, %v3396_v36  ;;  %v1644_v21 = vsel %vm406_vm9, %v3585_v41, %v1635_v49  ;;  %1997 = vmatpush.msrb.mxu2 %v1956_v47  ;;  %v1620_v48 = vmul.f32 %v1612_v60, %v1601_v52  ;;  %2017 = vmatpush.msra.mxu3 %v1957_v54  ;;  %vm1973_vm9 = vcmask 801792  }
 0x9f3   :  { %v1663_v39 = vmul.f32 %v3903_v20, %v1644_v21  ;;  %v1664_v36 = vmul.f32 %v1656_v34, %v1642_v4  ;;  %v1621_v41 = vmul.f32 %v1613_v37, %v1599_v44  ;;  %v1574_v62 = vmul.f32 %v1566_v33, %v1562_v14 }
 0x9f4   :  { %1998 = vmatpush.msrb.mxu2 %v1813_v42  ;;  %2018 = vmatpush.msra.mxu3 %v1815_v2  ;;  %v1953_v60 = vsel %vm1526_vm13, %v1579_v19, %v1809_v63  ;;  %v1816_v34 = vrot.slane %v3691_v56, 2  ;;  %v1810_v29 = vrot.slane %v1620_v48, 2  ;;  %v1569_v56 = vperm.slane %v3677_v17, 3 }
 0x9f5   :  { %v1842_v25 = vrot.slane %v1663_v39, 4  ;;  %v1843_v31 = vrot.slane %v1664_v36, 4  ;;  %v1811_v26 = vrot.slane %v1621_v41, 2  ;;  %v1568_v37 = vperm.slane %v3677_v17, 2 }
 0x9f6   :  { %1999 = vmatpush.msrb.mxu2 %v1952_v1  ;;  %2019 = vmatpush.msra.mxu3 %v1953_v60  ;;  %v1556_v8 = vsel %vm1555_vm8, %v1548_v43, %v1552_v45 }
 0x9f7   :  { %v1849_v58 = vsel %vm97_vm0, %v1842_v25, %v3904_v57  ;;  %v1851_v55 = vsel %vm97_vm0, %v1843_v31, %v1850_v38  ;;  %v1958_v3 = vsel %vm97_vm0, %v1816_v34, %v1842_v25  ;;  %v1959_v33 = vsel %vm97_vm0, %v1818_v30, %v1843_v31 }
 0x9f8   :  { %2000 = vmatpush.msrb.mxu2 %v1574_v62  ;;  %2036 = vmatpush.msrb.mxu0 %v1849_v58  ;;  %v1817_v38 = vsel %vm1526_vm13, %v1810_v29, %v1816_v34  ;;  %v1819_v28 = vsel %vm1526_vm13, %v1811_v26, %v1818_v30  ;;  %v1577_v32 = vmul.f32 %v1569_v56, %v1556_v8 }
 0x9f9   :  { %2056 = vmatpush.msrb.mxu1 %v1851_v55  ;;  %2369 = vmatmul.msk.f32.vlgmr.msrb.gmra.mxu2 %vm1973_vm9, %v1972_v12  ;;  %v1544_v40 = vpop.permute.xlu1 %1543 }
 0x9fa   :  { %v1560_v18 = vsel %vm1555_vm8, %v3658_v46, %v1544_v40  ;;  %2037 = vmatpush.msrb.mxu0 %v1958_v3 }
 0x9fb   :  { %v1575_v61 = vmul.f32 %v1567_v7, %v1560_v18  ;;  %2057 = vmatpush.msrb.mxu1 %v1959_v33  ;;  %v1558_v7 = vsel %vm1555_vm8, %v1544_v40, %v1548_v43 }
 0x9fc   :  { %2038 = vmatpush.msrb.mxu0 %v1817_v38  ;;  %v1576_v51 = vmul.f32 %v1568_v37, %v1558_v7 }
 0x9fd   :  { %2058 = vmatpush.msrb.mxu1 %v1819_v28  ;;  %2020 = vmatpush.msra.mxu3 %v1575_v61 }
 0x9fe   :  { %2371 = vmatmul.msk.f32.vlgmr.msra.gmra.mxu3 %vm1973_vm9, %v1972_v12 }
 0xa01   :  { %v1550_v46 = vpop.permute.xlu1 %1549 }
 0xa02   :  { %v1557_v27 = vsel %vm1555_vm8, %v1550_v46, %v3503_v0  ;;  %v1559_v53 = vsel %vm1555_vm8, %v3436_v5, %v1550_v46 }
 0xa03   :  { %v1580_v11 = vmul.f32 %v1568_v37, %v1559_v53  ;;  %v1581_v22 = vmul.f32 %v1569_v56, %v1557_v27 }
 0xa05   :  { %v1954_v24 = vsel %vm1526_vm13, %v1580_v11, %v1810_v29  ;;  %v1955_v17 = vsel %vm1526_vm13, %v1581_v22, %v1811_v26 }
 0xa06   :  { %2039 = vmatpush.msrb.mxu0 %v1954_v24  ;;  %2059 = vmatpush.msrb.mxu1 %v1955_v17 }
 0xa08   :  { %2040 = vmatpush.msrb.mxu0 %v1576_v51  ;;  %2060 = vmatpush.msrb.mxu1 %v1577_v32 }
 0xa09   :  { %2373 = vmatmul.msk.f32.vlgmr.msrb.gmra.mxu0 %vm1973_vm9, %v1972_v12  ;;  %2375 = vmatmul.msk.f32.vlgmr.msrb.gmra.mxu1 %vm1973_vm9, %v1972_v12 }
 0xa7c   :  { %v2002_v5 = vpop.f32.mrf.mxu2 }
 0xa7d   :  { %v2376_v0 = vmul.f32 -1.442695, %v2002_v5 }
 0xa7f   :  { %2427 = vpow2.f32 %v2376_v0 }
 0xa81   :  { %v2022_v59 = vpop.f32.mrf.mxu3 }
 0xa82   :  { %v2377_v63 = vmul.f32 -1.442695, %v2022_v59 }
 0xa84   :  { %2429 = vpow2.f32 %v2377_v63 }
 0xa85   :  { %v2428_v9 = vpop.eup %2427 }
 0xa86   :  { %v2077_v35 = vadd.f32 1.0, %v2428_v9  ;;  %v2042_v44 = vpop.f32.mrf.mxu0  ;;  %v2062_v52 = vpop.f32.mrf.mxu1 }
 0xa87   :  { %v2378_v49 = vmul.f32 -1.442695, %v2042_v44  ;;  %v2379_v47 = vmul.f32 -1.442695, %v2062_v52  ;;  %v3905_v44 = vld [vmem:[#allocation15_spill] sm:$0xff] }
 0xa88   :  { %2431 = vrcp.f32 %v2077_v35  ;;  %vm2086_vm0 = vweird.f32 %v2077_v35  ;;  %v2092_v36 = vand.u32 2147483648, %v2077_v35  ;;  %v2090_v41 = vand.u32 2147483647, %v2077_v35 }
 0xa89   :  { %2433 = vpow2.f32 %v2378_v49  ;;  %v3906_v49 = vld [vmem:[#allocation18_spill] sm:$0xff] }
 0xa8a   :  { %v2430_v45 = vpop.eup %2429  ;;  %2435 = vpow2.f32 %v2379_v47  ;;  %v2093_v31 = vor.u32 1.1754944e-38, %v2092_v36  ;;  %vm2091_vm3 = vcmp.eq.f32.partialorder %v2090_v41, 8.507059e+37  ;;  %v3912_v36 = vld [vmem:[#allocation10_spill] sm:$0xff]  ;;  %v3913_v41 = vld [vmem:[#allocation11_spill] sm:$0xff] }
 0xa8b   :  { %v2078_v4 = vadd.f32 1.0, %v2430_v45 }
 0xa8d   :  { %2437 = vrcp.f32 %v2078_v4  ;;  %v2105_v62 = vand.u32 2147483647, %v2078_v4  ;;  %v2107_v60 = vand.u32 2147483648, %v2078_v4  ;;  %vm2101_vm4 = vweird.f32 %v2078_v4 }
 0xa8e   :  { %v2432_v21 = vpop.eup %2431 }
 0xa8f   :  { %v2434_v54 = vpop.eup %2433  ;;  %v2082_v42 = vmul.f32 %v2432_v21, %v2077_v35  ;;  %vm2087_vm5 = vweird.f32 %v2432_v21  ;;  %vm2106_vm7 = vcmp.eq.f32.partialorder %v2105_v62, 8.507059e+37  ;;  %v2108_v3 = vor.u32 1.1754944e-38, %v2107_v60 }
 0xa90   :  { %v2436_v14 = vpop.eup %2435  ;;  %v2079_v48 = vadd.f32 1.0, %v2434_v54  ;;  %vm2088_vm2 = vmor %vm2086_vm0, %vm2087_vm5 }
 0xa91   :  { %v2083_v20 = vsub.f32 1.0, %v2082_v42  ;;  %v2080_v39 = vadd.f32 1.0, %v2436_v14 }
 0xa92   :  { %2439 = vrcp.f32 %v2079_v48  ;;  %v2122_v33 = vand.u32 2147483648, %v2079_v48  ;;  %v2120_v61 = vand.u32 2147483647, %v2079_v48  ;;  %vm2116_vm13 = vweird.f32 %v2079_v48 }
 0xa93   :  { %v2438_v15 = vpop.eup %2437  ;;  %v2084_v19 = vmul.f32 %v2432_v21, %v2083_v20  ;;  %2441 = vrcp.f32 %v2080_v39  ;;  %v2137_v28 = vand.u32 2147483648, %v2080_v39  ;;  %v2135_v46 = vand.u32 2147483647, %v2080_v39 }
 0xa94   :  { %v2097_v2 = vmul.f32 %v2438_v15, %v2078_v4  ;;  %vm2102_vm15 = vweird.f32 %v2438_v15  ;;  %v2123_v7 = vor.u32 1.1754944e-38, %v2122_v33  ;;  %vm2131_vm6 = vweird.f32 %v2080_v39  ;;  %v3908_v4 = vld [vmem:[#allocation16_spill] sm:$0xff] }
 0xa95   :  { %v2085_v25 = vadd.f32 %v2432_v21, %v2084_v19  ;;  %vm2103_vm1 = vmor %vm2101_vm4, %vm2102_vm15  ;;  %vm2121_vm14 = vcmp.eq.f32.partialorder %v2120_v61, 8.507059e+37  ;;  %vm2136_vm9 = vcmp.eq.f32.partialorder %v2135_v46, 8.507059e+37  ;;  %v2138_v51 = vor.u32 1.1754944e-38, %v2137_v28 }
 0xa96   :  { %v2098_v1 = vsub.f32 1.0, %v2097_v2 }
 0xa97   :  { %v2089_v12 = vsel %vm2088_vm2, %v2432_v21, %v2085_v25  ;;  %v3909_v21 = vld [vmem:[#allocation19_spill] sm:$0xff] }
 0xa98   :  { %v2440_v34 = vpop.eup %2439  ;;  %v2099_v29 = vmul.f32 %v2438_v15, %v2098_v1  ;;  %v2094_v57 = vsel %vm2091_vm3, %v2093_v31, %v2089_v12  ;;  %v3914_v1 = vld [vmem:[#allocation13_spill] sm:$0xff] }
 0xa99   :  { %v2442_v58 = vpop.eup %2441  ;;  %v2112_v55 = vmul.f32 %v2440_v34, %v2079_v48  ;;  %v2141_v40 = vperm.slane %v2094_v57, 0  ;;  %vm2117_vm10 = vweird.f32 %v2440_v34  ;;  %v3911_v48 = vld [vmem:[#allocation12_spill] sm:$0xff] }
 0xa9a   :  { %v2100_v30 = vadd.f32 %v2438_v15, %v2099_v29  ;;  %v2127_v26 = vmul.f32 %v2442_v58, %v2080_v39  ;;  %vm2132_vm12 = vweird.f32 %v2442_v58  ;;  %vm2118_vm11 = vmor %vm2116_vm13, %vm2117_vm10 }
 0xa9b   :  { %v2113_v18 = vsub.f32 1.0, %v2112_v55  ;;  %v2145_v8 = vmul.f32 %v2141_v40, %v3003_v23  ;;  %vm2133_vm8 = vmor %vm2131_vm6, %vm2132_vm12  ;;  %v2149_v5 = vmul.f32 %v2141_v40, %v3000_v16  ;;  %v3907_v16 = vld [vmem:[#allocation14_spill] sm:$0xff] }
 0xa9c   :  { %v2128_v38 = vsub.f32 1.0, %v2127_v26  ;;  %v2104_v43 = vsel %vm2103_vm1, %v2438_v15, %v2100_v30 }
 0xa9d   :  { %v2114_v56 = vmul.f32 %v2440_v34, %v2113_v18  ;;  %v2109_v37 = vsel %vm2106_vm7, %v2108_v3, %v2104_v43  ;;  %v3774_v23 = vadd.f32 %v2145_v8, %v2829_v50  ;;  %v3786_v45 = vadd.f32 %v2149_v5, %v3907_v16 }
 0xa9e   :  { %v2129_v27 = vmul.f32 %v2442_v58, %v2128_v38  ;;  %v2142_v53 = vperm.slane %v2109_v37, 0 }
 0xa9f   :  { %v2115_v11 = vadd.f32 %v2440_v34, %v2114_v56  ;;  %v2169_v14 = vmul.f32 %v3774_v23, %v3774_v23  ;;  %v2173_v29 = vmul.f32 %v3786_v45, %v3786_v45 }
 0xaa0   :  { %v2130_v22 = vadd.f32 %v2442_v58, %v2129_v27  ;;  %v2150_v24 = vmul.f32 %v2142_v53, %v2994_v6  ;;  %v2146_v17 = vmul.f32 %v2142_v53, %v2997_v10 }
 0xaa1   :  { %v2119_v32 = vsel %vm2118_vm11, %v2440_v34, %v2115_v11 }
 0xaa2   :  { %v2124_v0 = vsel %vm2121_vm14, %v2123_v7, %v2119_v32  ;;  %v2134_v59 = vsel %vm2133_vm8, %v2442_v58, %v2130_v22  ;;  %v3777_v63 = vadd.f32 %v2146_v17, %v2831_v13  ;;  %v3780_v6 = vadd.f32 %v2150_v24, %v3905_v44  ;;  %v3910_v13 = vld [vmem:[#allocation17_spill] sm:$0xff] }
 0xaa3   :  { %v2139_v9 = vsel %vm2136_vm9, %v2138_v51, %v2134_v59  ;;  %v2143_v35 = vperm.slane %v2124_v0, 0 }
 0xaa4   :  { %v2144_v10 = vperm.slane %v2139_v9, 0  ;;  %v2170_v52 = vmul.f32 %v3777_v63, %v3777_v63  ;;  %v2182_v39 = vadd.f32 %v3780_v6, %v3786_v45  ;;  %v2177_v19 = vadd.f32 %v3777_v63, %v3774_v23 }
 0xaa5   :  { %v2151_v47 = vmul.f32 %v2143_v35, %v3906_v49  ;;  %v2147_v50 = vmul.f32 %v2143_v35, %v3908_v4  ;;  %v2174_v31 = vmul.f32 %v3780_v6, %v3780_v6  ;;  %v2207_v49 = vld [vmem:[%s3862_s13] sm:$0xff] }
 0xaa6   :  { %v2152_v54 = vmul.f32 %v2144_v10, %v3909_v21  ;;  %v2148_v42 = vmul.f32 %v2144_v10, %v3910_v13  ;;  %v2187_v25 = vadd.f32 %v2170_v52, %v2169_v14 }
 0xaa7   :  { %v3794_v20 = vadd.f32 %v2151_v47, %v3911_v48  ;;  %v3799_v15 = vadd.f32 %v2147_v50, %v3912_v36  ;;  %v2192_v3 = vadd.f32 %v2174_v31, %v2173_v29 }
 0xaa8   :  { %v3804_v2 = vadd.f32 %v2148_v42, %v3913_v41  ;;  %v3809_v62 = vadd.f32 %v2152_v54, %v3914_v1  ;;  %v2233_v54 = vld [vmem:[%s3863_s14] sm:$0xff]  ;;  %v2208_v42 = vld [vmem:[%s3862_s13 + $0x8] sm:$0xff]  ;;  %s2520_s13 = smov [#allocation7]  }
 0xaa9   :  { %v2183_v60 = vadd.f32 %v2182_v39, %v3794_v20  ;;  %v2178_v12 = vadd.f32 %v2177_v19, %v3799_v15  ;;  %v2171_v34 = vmul.f32 %v3799_v15, %v3799_v15  ;;  %v2175_v57 = vmul.f32 %v3794_v20, %v3794_v20  ;;  %v2234_v19 = vld [vmem:[%s3863_s14 + $0x8] sm:$0xff]  ;;  %s2296_s14 = sshll.u32 %s2520_s13, 4  ;;  %s2297_s14 = int_to_ptr.vmem [resolvable:$true] %s2296_s14 }
 0xaaa   :  { %v2172_v30 = vmul.f32 %v3804_v2, %v3804_v2  ;;  %v2176_v33 = vmul.f32 %v3809_v62, %v3809_v62 }
 0xaab   :  { %v2184_v58 = vadd.f32 %v2183_v60, %v3809_v62  ;;  %v2179_v55 = vadd.f32 %v2178_v12, %v3804_v2  ;;  %v2188_v26 = vadd.f32 %v2187_v25, %v2171_v34  ;;  %v2193_v18 = vadd.f32 %v2192_v3, %v2175_v57 }
 0xaad   :  { %2185 = vadd.xlane.f32.xlu1 %v2184_v58  ;;  %2180 = vadd.xlane.f32.xlu0 %v2179_v55  ;;  %v2189_v40 = vadd.f32 %v2188_v26, %v2172_v30  ;;  %v2194_v61 = vadd.f32 %v2193_v18, %v2176_v33 }
 0xaaf   :  { %2190 = vadd.xlane.f32.xlu2 %v2189_v40 }
 0xab5   :  { %2195 = vadd.xlane.f32.xlu0 %v2194_v61 }
 0xb20   :  { %v2181_v38 = vpop.xlane.xlu0 %2180  ;;  %v2186_v43 = vpop.xlane.xlu1 %2185 }
 0xb21   :  { %v2197_v28 = vmul.f32 0.001953125, %v2181_v38  ;;  %v2198_v27 = vmul.f32 0.001953125, %v2186_v43 }
 0xb22   :  { %v2191_v56 = vpop.xlane.xlu2 %2190 }
 0xb23   :  { %v2201_v37 = vmul.f32 %v2197_v28, %v2197_v28  ;;  %v2199_v46 = vmul.f32 0.001953125, %v2191_v56  ;;  %v2202_v11 = vmul.f32 %v2198_v27, %v2198_v27 }
 0xb25   :  { %v2203_v53 = vsub.f32 %v2199_v46, %v2201_v37 }
 0xb27   :  { %v2205_v8 = vmax.f32 %v2203_v53, 0.0 }
 0xb28   :  { %v2196_v7 = vpop.xlane.xlu0 %2195 }
 0xb29   :  { %v2209_v22 = vadd.f32 1e-05, %v2205_v8  ;;  %v2200_v24 = vmul.f32 0.001953125, %v2196_v7 }
 0xb2b   :  { %2443 = vrsqrt.f32 %v2209_v22  ;;  %v2204_v17 = vsub.f32 %v2200_v24, %v2202_v11  ;;  %vm2217_vm5 = vweird.f32 %v2209_v22 }
 0xb2d   :  { %v2206_v32 = vmax.f32 %v2204_v17, 0.0 }
 0xb2f   :  { %v2210_v51 = vadd.f32 1e-05, %v2206_v32 }
 0xb31   :  { %v2444_v5 = vpop.eup %2443  ;;  %2445 = vrsqrt.f32 %v2210_v51  ;;  %vm2227_vm15 = vweird.f32 %v2210_v51 }
 0xb32   :  { %v2212_v0 = vmul.f32 %v2444_v5, %v2209_v22  ;;  %vm2218_vm0 = vweird.f32 %v2444_v5 }
 0xb33   :  { %vm2219_vm2 = vmor %vm2217_vm5, %vm2218_vm0 }
 0xb34   :  { %v2213_v59 = vmul.f32 %v2444_v5, %v2212_v0 }
 0xb36   :  { %v2214_v9 = vmul.f32 0.5, %v2213_v59 }
 0xb37   :  { %v2446_v35 = vpop.eup %2445 }
 0xb38   :  { %v2215_v44 = vsub.f32 1.5, %v2214_v9  ;;  %v2222_v10 = vmul.f32 %v2446_v35, %v2210_v51  ;;  %vm2228_vm3 = vweird.f32 %v2446_v35 }
 0xb39   :  { %vm2229_vm4 = vmor %vm2227_vm15, %vm2228_vm3 }
 0xb3a   :  { %v2223_v52 = vmul.f32 %v2446_v35, %v2222_v10  ;;  %v2216_v47 = vmul.f32 %v2444_v5, %v2215_v44 }
 0xb3c   :  { %v2224_v16 = vmul.f32 0.5, %v2223_v52  ;;  %v2220_v4 = vsel %vm2219_vm2, %v2444_v5, %v2216_v47 }
 0xb3d   :  { %v2231_v50 = vmul.f32 %v2220_v4, %v2207_v49 }
 0xb3e   :  { %v2225_v21 = vsub.f32 1.5, %v2224_v16 }
 0xb3f   :  { %2241 = vperm.xlu1 %2404, %v2231_v50   ;;  %v2235_v13 = vmul.f32 %v2231_v50, %v2197_v28 }
 0xb40   :  { %v2226_v14 = vmul.f32 %v2446_v35, %v2225_v21 }
 0xb41   :  { %v2237_v48 = vsub.f32 %v2233_v54, %v2235_v13 }
 0xb42   :  { %v2230_v39 = vsel %vm2229_vm4, %v2446_v35, %v2226_v14 }
 0xb43   :  { %2259 = vperm.xlu0 %2405, %v2237_v48   ;;  %v2232_v36 = vmul.f32 %v2230_v39, %v2208_v42 }
 0xb45   :  { %2246 = vperm.xlu2 %2406, %v2232_v36   ;;  %v2236_v41 = vmul.f32 %v2232_v36, %v2198_v27 }
 0xb47   :  { %v2238_v25 = vsub.f32 %v2234_v19, %v2236_v41 }
 0xb49   :  { %2264 = vperm.xlu1 %2404, %v2238_v25  }
 0xb9f   :  { %v2247_v26 = vpop.permute.xlu2 %2246 }
 0xba0   :  { %v2253_v61 = vmul.f32 %v2247_v26, %v3786_v45 }
 0xbb1   :  { %v2242_v31 = vpop.permute.xlu1 %2241 }
 0xbb2   :  { %v2249_v1 = vmul.f32 %v2242_v31, %v3774_v23  ;;  %v2250_v60 = vmul.f32 %v2242_v31, %v3777_v63  ;;  %v2251_v12 = vmul.f32 %v2242_v31, %v3799_v15  ;;  %v2252_v34 = vmul.f32 %v2242_v31, %v3804_v2 }
 0xbb3   :  { %v2254_v23 = vmul.f32 %v2247_v26, %v3780_v6  ;;  %v2255_v63 = vmul.f32 %v2247_v26, %v3794_v20  ;;  %v2256_v15 = vmul.f32 %v2247_v26, %v3809_v62 }
 0xbb5   :  { %v2260_v29 = vpop.permute.xlu0 %2259 }
 0xbb6   :  { %v2267_v57 = vadd.f32 %v2260_v29, %v2249_v1  ;;  %v2268_v58 = vadd.f32 %v2260_v29, %v2250_v60  ;;  %v2269_v55 = vadd.f32 %v2260_v29, %v2251_v12  ;;  %v2270_v30 = vadd.f32 %v2260_v29, %v2252_v34 }
 0xbb8   :  { %v2275_v40 = vmax.f32 %v2267_v57, 0.0  ;;  %v2276_v3 = vmax.f32 %v2268_v58, 0.0  ;;  %v2277_v18 = vmax.f32 %v2269_v55, 0.0  ;;  %v2278_v33 = vmax.f32 %v2270_v30, 0.0 }
 0xbba   :  { %2283 = vst [vmem:[#allocation7] sm:$0xff] %v2275_v40 }
 0xbbb   :  { %2284 = vst [vmem:[#allocation7 + $0x8] sm:$0xff] %v2276_v3  ;;  %v2265_v2 = vpop.permute.xlu1 %2264 }
 0xbbc   :  { %2288 = vst [vmem:[#allocation7 + $0x20] sm:$0xff] %v2277_v18  ;;  %v2271_v38 = vadd.f32 %v2265_v2, %v2253_v61  ;;  %v2272_v28 = vadd.f32 %v2265_v2, %v2254_v23  ;;  %v2273_v43 = vadd.f32 %v2265_v2, %v2255_v63  ;;  %v2274_v56 = vadd.f32 %v2265_v2, %v2256_v15 }
 0xbbd   :  { %2289 = vst [vmem:[#allocation7 + $0x28] sm:$0xff] %v2278_v33 }
 0xbbe   :  { %v2279_v37 = vmax.f32 %v2271_v38, 0.0  ;;  %v2280_v46 = vmax.f32 %v2272_v28, 0.0  ;;  %v2281_v45 = vmax.f32 %v2273_v43, 0.0  ;;  %v2282_v6 = vmax.f32 %v2274_v56, 0.0 }
 0xbc0   :  { %2285 = vst [vmem:[#allocation7 + $0x10] sm:$0xff] %v2279_v37 }
 0xbc1   :  { %2286 = vst [vmem:[#allocation7 + $0x18] sm:$0xff] %v2280_v46 }
 0xbc2   :  { %2290 = vst [vmem:[#allocation7 + $0x30] sm:$0xff] %v2281_v45 }
 0xbc3   :  { %2291 = vst [vmem:[#allocation7 + $0x38] sm:$0xff] %v2282_v6 }
 0xbc4   :  { %2304 = dma.vmem_to_hbm [thread:$0]  %s2297_s14, 1024, %s2299_s16, [#allocation6], %s2521_s8, %s2521_s8, %s2509_s27  }
 0xbc5   :  { %2497 = dma.done.wait [#allocation6], 1024  }
 0xbc6   :  { %2498 = vsyncadd [#allocation6], 4294966272 }
 0xbc7   :  { %2309 = vsyncpa [#allocation5], 1 }
 0xbc8   :  { %2310 = vsyncpa [#allocation6], 1 }

</bundles_post_ra>
